<compile_context>
chip_gen: v6e
topology: v6e:2x2x1
jax: 0.10.0
libtpu: 0.0.40
codegen_flags: <defaults>
</compile_context>

<pallas_src>
import functools

import jax
import jax.numpy as jnp
from jax import lax
from jax.experimental import pallas as pl
from jax.experimental.pallas import tpu as pltpu


_SQRT1_2 = 0.7071067811865476
_LN_EPS = 1e-5
_VMEM_CAP = [None]


def _vmem_limit():
    """Scoped-VMEM cap derived from the device (v7x: 64 MiB/TC -> 32 MiB cap here)."""
    if _VMEM_CAP[0] is None:
        try:
            _VMEM_CAP[0] = int(pltpu.get_tpu_info().vmem_capacity_bytes)
        except Exception:
            _VMEM_CAP[0] = 64 * 1024 * 1024
    return min(32 * 1024 * 1024, _VMEM_CAP[0] // 2)


def _round_up(x, m):
    return (x + m - 1) // m * m


def _pick_tile(dim, pref):
    # Preferred tile when it divides the dim, else one full-dim block (no pad/slice copies).
    return pref if (dim > pref and dim % pref == 0) else dim


def _gelu(x):
    # exact GELU (erf form) == torch.nn.GELU() default
    return 0.5 * x * (1.0 + lax.erf(x * _SQRT1_2))


# ----------------------------- tiled linear (bias / GELU / residual epilogue) -----------

def _linear_kernel(x_ref, w_ref, *rest, nk, has_bias, has_res, activation):
    idx = 0
    b_ref = rest[idx] if has_bias else None
    idx += 1 if has_bias else 0
    r_ref = rest[idx] if has_res else None
    idx += 1 if has_res else 0
    o_ref = rest[idx]
    acc_ref = rest[idx + 1] if nk > 1 else None

    def epilogue(acc):
        if has_bias:
            acc = acc + b_ref[...]
        if activation == "gelu":
            acc = _gelu(acc)
        if has_res:
            acc = acc + r_ref[...].astype(jnp.float32)
        o_ref[...] = acc.astype(o_ref.dtype)

    if nk == 1:
        # single K block: no accumulator scratch, compute + write the output directly
        epilogue(jnp.dot(x_ref[...], w_ref[...], preferred_element_type=jnp.float32))
    else:
        k = pl.program_id(2)

        @pl.when(k == 0)
        def _():
            acc_ref[...] = jnp.zeros_like(acc_ref)

        acc_ref[...] += jnp.dot(x_ref[...], w_ref[...],
                                preferred_element_type=jnp.float32)

        @pl.when(k == nk - 1)
        def _():
            epilogue(acc_ref[...])


def linear(x, w, b=None, residual=None, activation=None, out_dtype=jnp.bfloat16,
           tm=512, tn=256, tk=1024):
    """y = act(x @ w + b) + residual.  x bf16 (M,K), w bf16 (K,N) (pre-cast in prepare)."""
    M, K = x.shape
    N = w.shape[1]
    if x.dtype != jnp.bfloat16:
        x = x.astype(jnp.bfloat16)
    if w.dtype != jnp.bfloat16:
        w = w.astype(jnp.bfloat16)
    tm_e, tn_e, tk_e = _pick_tile(M, tm), _pick_tile(N, tn), _pick_tile(K, tk)
    nm, nn, nk = M // tm_e, N // tn_e, K // tk_e

    args = [x, w]
    in_specs = [pl.BlockSpec((tm_e, tk_e), lambda i, j, k: (i, k)),
                pl.BlockSpec((tk_e, tn_e), lambda i, j, k: (k, j))]
    if b is not None:
        args.append(b)
        in_specs.append(pl.BlockSpec((1, tn_e), lambda i, j, k: (0, j)))
    if residual is not None:
        if residual.dtype != jnp.bfloat16:
            residual = residual.astype(jnp.bfloat16)
        args.append(residual)
        in_specs.append(pl.BlockSpec((tm_e, tn_e), lambda i, j, k: (i, j)))

    scratch = [pltpu.VMEM((tm_e, tn_e), jnp.float32)] if nk > 1 else []
    return pl.pallas_call(
        functools.partial(_linear_kernel, nk=nk, has_bias=b is not None,
                          has_res=residual is not None, activation=activation),
        out_shape=jax.ShapeDtypeStruct((M, N), out_dtype),
        grid=(nm, nn, nk),
        in_specs=in_specs,
        out_specs=pl.BlockSpec((tm_e, tn_e), lambda i, j, k: (i, j)),
        scratch_shapes=scratch,
        compiler_params=pltpu.CompilerParams(
            dimension_semantics=("parallel", "parallel", "arbitrary"),
            vmem_limit_bytes=_vmem_limit()),
    )(*args)


# ----------------------------- fused LayerNorm + linear ---------------------------------

def _ln_linear_kernel(x_ref, g_ref, be_ref, w_ref, *rest, has_bias, activation, cache_xn):
    idx = 0
    b_ref = rest[idx] if has_bias else None
    idx += 1 if has_bias else 0
    o_ref = rest[idx]
    xn_ref = rest[idx + 1] if cache_xn else None

    def compute_xn():
        x = x_ref[...].astype(jnp.float32)
        mean = jnp.mean(x, axis=-1, keepdims=True)
        var = jnp.mean(jnp.square(x - mean), axis=-1, keepdims=True)
        xn = (x - mean) * lax.rsqrt(var + _LN_EPS) * g_ref[...] + be_ref[...]
        return xn.astype(jnp.bfloat16)

    if cache_xn:
        # compute LN once per row-tile (j == 0) and reuse the cached bf16 xn for j > 0
        @pl.when(pl.program_id(1) == 0)
        def _():
            xn_ref[...] = compute_xn()
        xn = xn_ref[...]
    else:
        xn = compute_xn()

    acc = jnp.dot(xn, w_ref[...], preferred_element_type=jnp.float32)
    if has_bias:
        acc = acc + b_ref[...]
    if activation == "gelu":
        acc = _gelu(acc)
    o_ref[...] = acc.astype(o_ref.dtype)


def ln_linear(x, g, beta, w, b=None, activation=None, out_dtype=jnp.bfloat16,
              tm=256, tn=512):
    """Fused y = act(LayerNorm(x) @ w + b). LN axis = full K (kept in one block)."""
    M, K = x.shape
    N = w.shape[1]
    if x.dtype != jnp.bfloat16:
        x = x.astype(jnp.bfloat16)
    if w.dtype != jnp.bfloat16:
        w = w.astype(jnp.bfloat16)
    tm_e, tn_e = _pick_tile(M, tm), _pick_tile(N, tn)
    nm, nn = M // tm_e, N // tn_e
    cache_xn = nn > 1

    args = [x, g, beta, w]
    in_specs = [pl.BlockSpec((tm_e, K), lambda i, j: (i, 0)),
                pl.BlockSpec((1, K), lambda i, j: (0, 0)),
                pl.BlockSpec((1, K), lambda i, j: (0, 0)),
                pl.BlockSpec((K, tn_e), lambda i, j: (0, j))]
    if b is not None:
        args.append(b)
        in_specs.append(pl.BlockSpec((1, tn_e), lambda i, j: (0, j)))

    scratch = [pltpu.VMEM((tm_e, K), jnp.bfloat16)] if cache_xn else []
    return pl.pallas_call(
        functools.partial(_ln_linear_kernel, has_bias=b is not None,
                          activation=activation, cache_xn=cache_xn),
        out_shape=jax.ShapeDtypeStruct((M, N), out_dtype),
        grid=(nm, nn),
        in_specs=in_specs,
        out_specs=pl.BlockSpec((tm_e, tn_e), lambda i, j: (i, j)),
        scratch_shapes=scratch,
        compiler_params=pltpu.CompilerParams(
            dimension_semantics=("parallel", "arbitrary" if cache_xn else "parallel"),
            vmem_limit_bytes=_vmem_limit()),
    )(*args)


# ----------------------------- fast-attention core kernel -------------------------------

def _fast_attn_kernel(q_ref, k_ref, v_ref, c_ref, sa_ref, sb_ref,
                      wq_ref, wk_ref, e_ref, wr_ref, br_ref, o_ref):
    q = q_ref[...]                          # (N, bw) bf16, head-major lane layout
    k = k_ref[...]
    v = v_ref[...]
    qf = q.astype(jnp.float32)
    kf = k.astype(jnp.float32)
    vf = v.astype(jnp.float32)

    C = c_ref[...]                          # (N, bw) f32 cos (1.0 outside rotary region / pad)
    SA = sa_ref[...]                        # (N, bw) f32 -sin on even lanes of rotary region
    SB = sb_ref[...]                        # (N, bw) f32 +sin on odd  lanes of rotary region
    lanes = C.shape[-1]

    def rotate(t):
        # interleaved-pair rotate-half via XLU lane rolls + signed sin masks (no MXU, f32)
        nxt = pltpu.roll(t, shift=lanes - 1, axis=1)   # out[j] = t[j+1]
        prv = pltpu.roll(t, shift=1, axis=1)           # out[j] = t[j-1]
        return t * C + nxt * SA + prv * SB

    qr = rotate(qf)
    kr = rotate(kf)
    vr = rotate(vf)

    def softmax_seq(logits):                # softmax over the sequence (sublane) axis
        m = jnp.max(logits, axis=0, keepdims=True)
        e = jnp.exp(logits - m)
        return e * pl.reciprocal(jnp.sum(e, axis=0, keepdims=True), approx=True)

    wq = wq_ref[...]
    wk = wk_ref[...]
    eb = e_ref[...]

    # global query token per head (attention-logit scale folded into wq at prepare time)
    q_logits = jnp.dot(q, wq, preferred_element_type=jnp.float32)        # (N, hg)
    q_attn = softmax_seq(q_logits)
    q_attn_e = jnp.dot(q_attn.astype(jnp.bfloat16), eb,
                       preferred_element_type=jnp.float32)               # (N, bw)
    global_q = jnp.sum(q_attn_e * qr, axis=0, keepdims=True)             # (1, bw)

    # global key token: bias keys with global query (adjacent pair-sum folded into wk)
    kb = (kf * global_q).astype(jnp.bfloat16)
    k_logits = jnp.dot(kb, wk, preferred_element_type=jnp.float32)
    k_attn = softmax_seq(k_logits)
    k_attn_e = jnp.dot(k_attn.astype(jnp.bfloat16), eb,
                       preferred_element_type=jnp.float32)
    global_k = jnp.sum(k_attn_e * kr, axis=0, keepdims=True)

    # bias the ROTATED values; pair-sum + to_r folded into block-diagonal wr; q residual
    u = (vr * global_k).astype(jnp.bfloat16)
    r = jnp.dot(u, wr_ref[...], preferred_element_type=jnp.float32) + br_ref[...]
    o_ref[...] = (r + qf).astype(o_ref.dtype)


def fast_attention_core(qkv, attn_c, wr_blk, br):
    """FastAttention core over all heads; grid = (batch, head_groups), both parallel."""
    B, N, three_inner = qkv.shape
    G, bw, hg = attn_c["Wq"].shape          # head groups / lane width per group / heads per group
    inner = G * bw

    def qkv_view(sec):                       # q/k/v as lane-aligned views of the same array
        return pl.BlockSpec((None, N, bw), lambda b, g, sec=sec: (b, 0, sec * G + g))

    in_specs = [
        qkv_view(0), qkv_view(1), qkv_view(2),
        pl.BlockSpec((N, bw), lambda b, g: (0, g)),             # cos
        pl.BlockSpec((N, bw), lambda b, g: (0, g)),             # -sin (even lanes)
        pl.BlockSpec((N, bw), lambda b, g: (0, g)),             # +sin (odd lanes)
        pl.BlockSpec((None, bw, hg), lambda b, g: (g, 0, 0)),   # to_q_attn_logits (block diag)
        pl.BlockSpec((None, bw, hg), lambda b, g: (g, 0, 0)),   # to_k_attn_logits (pair-sum folded)
        pl.BlockSpec((None, hg, bw), lambda b, g: (g, 0, 0)),   # head -> lane broadcast matrix
        pl.BlockSpec((None, bw, bw), lambda b, g: (g, 0, 0)),   # to_r (pair-sum folded, block diag)
        pl.BlockSpec((1, bw), lambda b, g: (0, g)),             # to_r bias
    ]
    return pl.pallas_call(
        _fast_attn_kernel,
        out_shape=jax.ShapeDtypeStruct((B, N, inner), jnp.bfloat16),
        grid=(B, G),
        in_specs=in_specs,
        out_specs=pl.BlockSpec((None, N, bw), lambda b, g: (b, 0, g)),
        compiler_params=pltpu.CompilerParams(
            dimension_semantics=("parallel", "parallel"),
            vmem_limit_bytes=_vmem_limit()),
    )(qkv, qkv, qkv,
      attn_c["C"], attn_c["SA"], attn_c["SB"],
      attn_c["Wq"], attn_c["Wk"], attn_c["E"], wr_blk, br)


# ----------------------------- plain-JAX glue --------------------------------------------

def patchify(x, p):
    # 'b c (h p1) (w p2) -> b (h w) (p1 p2 c)'
    B, C, H, W = x.shape
    h, w = H // p, W // p
    x = x.reshape(B, C, h, p, w, p)
    x = x.transpose(0, 2, 4, 3, 5, 1)
    return x.reshape(B, h * w, p * p * C)


# ----------------------------- parameters ------------------------------------------------

def init_params(key, cfg):
    dim, heads, dh = cfg["dim"], cfg["heads"], cfg["dim_head"]
    inner = heads * dh
    mult, depth = cfg["ff_mult"], cfg["depth"]
    patch_dim = cfg["patch"] ** 2 * 3
    npatch = (cfg["image_size"] // cfg["patch"]) ** 2
    keys = jax.random.split(key, 8 + depth)

    def w(k, shape, s=0.02, dtype=jnp.bfloat16):
        return (jax.random.normal(k, shape, jnp.float32) * s).astype(dtype)

    params = {
        "patch_w_t": w(keys[0], (patch_dim, dim)),
        "patch_b": jnp.zeros((dim,), jnp.float32),
        "pos_emb": jax.random.normal(keys[1], (1, npatch + 1, dim), jnp.float32),
        "cls_token": jax.random.normal(keys[2], (1, 1, dim), jnp.float32),
        # shared across all layers (weight tying in the PyTorch module)
        "wq_logits": w(keys[3], (dh,), dtype=jnp.float32),
        "wk_logits": w(keys[4], (dh // 2,), dtype=jnp.float32),
        "lnf_g": jnp.ones((dim,), jnp.float32),
        "lnf_b": jnp.zeros((dim,), jnp.float32),
        "logits_w_t": w(keys[5], (dim, cfg["num_tokens"])),
        "logits_b": jnp.zeros((cfg["num_tokens"],), jnp.float32),
        "layers": [],
    }
    for i in range(depth):
        ks = jax.random.split(keys[8 + i], 6)
        params["layers"].append({
            "ln1_g": jnp.ones((dim,), jnp.float32), "ln1_b": jnp.zeros((dim,), jnp.float32),
            "w_qkv_t": w(ks[0], (dim, 3 * inner)),
            "wr_t": w(ks[1], (dh // 2, dh), dtype=jnp.float32),
            "br": jnp.zeros((dh,), jnp.float32),
            "wout_t": w(ks[2], (inner, dim)),
            "bout": jnp.zeros((dim,), jnp.float32),
            "ln2_g": jnp.ones((dim,), jnp.float32), "ln2_b": jnp.zeros((dim,), jnp.float32),
            "w1_t": w(ks[3], (dim, dim * mult)),
            "b1": jnp.zeros((dim * mult,), jnp.float32),
            "w2_t": w(ks[4], (dim * mult, dim)),
            "b2": jnp.zeros((dim,), jnp.float32),
        })
    return params


def prepare_params(params, cfg):
    """One-time weight preparation, hoisted out of the forward hot path."""
    heads, dh = cfg["heads"], cfg["dim_head"]
    inner = heads * dh
    N = (cfg["image_size"] // cfg["patch"]) ** 2 + 1
    scale = dh ** -0.5

    # lane padding of heads*dim_head up to a 128 multiple (lane-dense attention output and
    # 128-aligned q/k/v views); head-group grid axis only when groups stay 128-aligned.
    if inner % 128 == 0:
        pad = 0
        G = 1
        for cand in (8, 4, 2):
            if heads % cand == 0 and (inner // cand) % 128 == 0:
                G = cand
                break
    else:
        pad = _round_up(inner, 128) - inner
        G = 1
    inner_p = inner + pad
    bw = inner_p // G
    hg = heads // G

    # ---- rotary tables: RotaryEmbedding(dim_head // 2) -> only the first dh//2 lanes rotate
    rd = dh // 2
    inv_freq = 1.0 / (10000.0 ** (jnp.arange(0, rd, 2, dtype=jnp.float32) / rd))
    t = jnp.arange(N, dtype=jnp.float32)
    freqs = jnp.repeat(jnp.einsum("i,j->ij", t, inv_freq), 2, axis=-1)      # (N, rd)
    cos, sin = jnp.cos(freqs), jnp.sin(freqs)
    C_head = jnp.concatenate([cos, jnp.ones((N, dh - rd), jnp.float32)], axis=-1)
    S_head = jnp.concatenate([sin, jnp.zeros((N, dh - rd), jnp.float32)], axis=-1)
    C = jnp.tile(C_head, (1, heads))
    S = jnp.tile(S_head, (1, heads))
    even = (jnp.arange(inner) % 2 == 0)[None, :]
    SA = jnp.where(even, -S, 0.0)     # pairs with roll "j+1": out[2i]   += -t[2i+1]*sin
    SB = jnp.where(even, 0.0, S)      # pairs with roll "j-1": out[2i+1] += +t[2i]  *sin
    if pad:
        C = jnp.pad(C, ((0, 0), (0, pad)), constant_values=1.0)
        SA = jnp.pad(SA, ((0, 0), (0, pad)))
        SB = jnp.pad(SB, ((0, 0), (0, pad)))

    def pad_rows(a):
        return a if a.shape[0] == bw else jnp.pad(a, ((0, bw - a.shape[0]), (0, 0)))

    def pad_cols(a):
        return a if a.shape[1] == bw else jnp.pad(a, ((0, 0), (0, bw - a.shape[1])))

    eye_hg = jnp.eye(hg, dtype=jnp.float32)
    wq_col = params["wq_logits"].reshape(dh, 1) * scale                     # scale folded in
    wk_col = jnp.repeat(params["wk_logits"].reshape(-1), 2).reshape(dh, 1) * scale  # pair-sum folded
    Wq = jnp.broadcast_to(pad_rows(jnp.kron(eye_hg, wq_col)), (G, bw, hg)).astype(jnp.bfloat16)
    Wk = jnp.broadcast_to(pad_rows(jnp.kron(eye_hg, wk_col)), (G, bw, hg)).astype(jnp.bfloat16)
    E = jnp.broadcast_to(pad_cols(jnp.kron(eye_hg, jnp.ones((1, dh), jnp.float32))),
                         (G, hg, bw)).astype(jnp.bfloat16)
    attn = dict(C=C, SA=SA, SB=SB, Wq=Wq, Wk=Wk, E=E)

    def vec(b):
        return b.reshape(1, -1).astype(jnp.float32)

    prep = dict(
        patch_w=params["patch_w_t"].astype(jnp.bfloat16),
        patch_b=vec(params["patch_b"]),
        pos_emb=params["pos_emb"].astype(jnp.bfloat16),
        cls_token=params["cls_token"].astype(jnp.bfloat16),
        lnf_g=vec(params["lnf_g"]), lnf_b=vec(params["lnf_b"]),
        logits_w=params["logits_w_t"].astype(jnp.bfloat16),
        logits_b=vec(params["logits_b"]),
        attn=attn, layers=[])

    for layer in params["layers"]:
        wqkv = layer["w_qkv_t"]
        wout = layer["wout_t"]
        if pad:
            q_w, k_w, v_w = jnp.split(wqkv, 3, axis=1)
            z = jnp.zeros((wqkv.shape[0], pad), wqkv.dtype)
            wqkv = jnp.concatenate([q_w, z, k_w, z, v_w, z], axis=1)
            wout = jnp.concatenate([wout, jnp.zeros((pad, wout.shape[1]), wout.dtype)], axis=0)
        wr_core = jnp.kron(eye_hg, jnp.repeat(layer["wr_t"], 2, axis=0))    # pair-sum + to_r
        wr_blk = jnp.broadcast_to(pad_cols(pad_rows(wr_core)), (G, bw, bw)).astype(jnp.bfloat16)
        br = jnp.pad(jnp.tile(layer["br"], heads), (0, pad)).reshape(1, inner_p).astype(jnp.float32)
        prep["layers"].append(dict(
            ln1_g=vec(layer["ln1_g"]), ln1_b=vec(layer["ln1_b"]),
            w_qkv=wqkv.astype(jnp.bfloat16),
            wr_blk=wr_blk, br=br,
            wout=wout.astype(jnp.bfloat16), bout=vec(layer["bout"]),
            ln2_g=vec(layer["ln2_g"]), ln2_b=vec(layer["ln2_b"]),
            w1=layer["w1_t"].astype(jnp.bfloat16), b1=vec(layer["b1"]),
            w2=layer["w2_t"].astype(jnp.bfloat16), b2=vec(layer["b2"])))
    return prep


# ----------------------------- forward pass -----------------------------------------------

def fast_transformer_forward(x, prep, cfg):
    dim = cfg["dim"]
    B = x.shape[0]

    patches = patchify(x, cfg["patch"]).astype(jnp.bfloat16)      # activations carried in bf16
    npatch, patch_dim = patches.shape[1], patches.shape[2]
    tok = linear(patches.reshape(B * npatch, patch_dim),
                 prep["patch_w"], prep["patch_b"]).reshape(B, npatch, dim)

    cls = jnp.broadcast_to(prep["cls_token"], (B, 1, dim))
    h = jnp.concatenate([cls, tok], axis=1)                       # (B, N, dim) bf16
    N = npatch + 1
    h = h + prep["pos_emb"][:, :N]
    # TODO(synk): nn.Dropout(0.1) is identity in eval mode; training-mode dropout not implemented.

    attn_c = prep["attn"]
    for layer in prep["layers"]:
        inner_p = layer["wout"].shape[0]

        # PreNorm(FastAttention) + residual: LN fused into QKV proj, residual fused into to_out
        hf = h.reshape(B * N, dim)
        qkv = ln_linear(hf, layer["ln1_g"], layer["ln1_b"], layer["w_qkv"])
        r = fast_attention_core(qkv.reshape(B, N, 3 * inner_p), attn_c,
                                layer["wr_blk"], layer["br"])
        h = linear(r.reshape(B * N, inner_p), layer["wout"], layer["bout"],
                   residual=hf).reshape(B, N, dim)

        # PreNorm(FeedForward) + residual: LN+GELU fused into FF1, residual fused into FF2
        hf = h.reshape(B * N, dim)
        z = ln_linear(hf, layer["ln2_g"], layer["ln2_b"], layer["w1"], layer["b1"],
                      activation="gelu")
        h = linear(z, layer["w2"], layer["b2"], residual=hf).reshape(B, N, dim)

    cls_out = h[:, 0]                                             # (B, dim)
    # final LayerNorm fused into the logits projection
    return ln_linear(cls_out, prep["lnf_g"], prep["lnf_b"],
                     prep["logits_w"], prep["logits_b"], out_dtype=jnp.float32)


# ----------------------------- main --------------------------------------------------------

if __name__ == "__main__":
    cfg = dict(num_tokens=10, dim=32, depth=2, max_seq_len=4,
               heads=4, dim_head=16, ff_mult=4,
               patch=8, image_size=16)

    key = jax.random.PRNGKey(0)
    pkey, xkey = jax.random.split(key)
    params = init_params(pkey, cfg)
    prep = prepare_params(params, cfg)     # one-time weight prep, outside the hot path

    # PyTorch-style NCHW input, 3 channels (the patch-embedding Linear hard-codes 3)
    x = jax.random.normal(xkey, (2, 3, cfg["image_size"], cfg["image_size"]), jnp.float32)

    forward = jax.jit(functools.partial(fast_transformer_forward, cfg=cfg))
    out = forward(x, prep)
    out = jax.block_until_ready(out)
    assert out.shape == (2, cfg["num_tokens"])
    assert bool(jnp.all(jnp.isfinite(out)))
    print("KERNEL_OK")
</pallas_src>

<mosaic_0001>
module attributes {stable_mosaic.version = 11 : i64} {
  func.func @_linear_kernel(%arg0: i32, %arg1: i32, %arg2: i32, %arg3: memref<8x192xbf16, #tpu.memory_space<vmem>>, %arg4: memref<192x32xbf16, #tpu.memory_space<vmem>>, %arg5: memref<1x32xf32, #tpu.memory_space<vmem>>, %arg6: memref<8x32xbf16, #tpu.memory_space<vmem>>) attributes {dimension_semantics = [#tpu.dimension_semantics<parallel>, #tpu.dimension_semantics<parallel>, #tpu.dimension_semantics<arbitrary>], iteration_bounds = array<i64: 1, 1, 1>, scalar_prefetch = 0 : i64, scratch_operands = 0 : i64, tpu.core_type = #tpu.core_type<tc>, window_params = [{transform_indices = @transform_0, window_bounds = array<i64: 8, 192>}, {transform_indices = @transform_1, window_bounds = array<i64: 192, 32>}, {transform_indices = @transform_2, window_bounds = array<i64: 1, 32>}, {transform_indices = @transform_3, window_bounds = array<i64: 8, 32>}]} {
    %c0 = arith.constant 0 : index
    %c0_0 = arith.constant 0 : index
    %0 = vector.load %arg3[%c0, %c0_0] : memref<8x192xbf16, #tpu.memory_space<vmem>>, vector<8x192xbf16>
    %c0_1 = arith.constant 0 : index
    %c0_2 = arith.constant 0 : index
    %1 = vector.load %arg4[%c0_1, %c0_2] : memref<192x32xbf16, #tpu.memory_space<vmem>>, vector<192x32xbf16>
    %cst = arith.constant dense<0.000000e+00> : vector<8x32xf32>
    %2 = tpu.matmul %0, %1, %cst {dimension_numbers = #tpu.dot_dimension_numbers<[1], [0], [0], [1], [0, 0, 1, 1], [], []>} : vector<8x192xbf16>, vector<192x32xbf16>, vector<8x32xf32> -> vector<8x32xf32>
    %c0_3 = arith.constant 0 : index
    %c0_4 = arith.constant 0 : index
    %3 = vector.load %arg5[%c0_3, %c0_4] : memref<1x32xf32, #tpu.memory_space<vmem>>, vector<1x32xf32>
    %4 = vector.broadcast %3 : vector<1x32xf32> to vector<8x32xf32>
    %5 = arith.addf %2, %4 : vector<8x32xf32>
    %6 = arith.truncf %5 : vector<8x32xf32> to vector<8x32xbf16>
    %c0_5 = arith.constant 0 : index
    %c0_6 = arith.constant 0 : index
    %7 = vector.load %arg6[%c0_5, %c0_6] : memref<8x32xbf16, #tpu.memory_space<vmem>>, vector<8x32xbf16>
    tpu.vector_store %arg6[%c0_5, %c0_6], %6 {strides = array<i32>} : memref<8x32xbf16, #tpu.memory_space<vmem>>, vector<8x32xbf16>,
    return
  }
  func.func @transform_0(%arg0: i32, %arg1: i32, %arg2: i32) -> (i32, i32) {
    %c0_i32 = arith.constant 0 : i32
    return %arg0, %arg2 : i32, i32
  }
  func.func @transform_1(%arg0: i32, %arg1: i32, %arg2: i32) -> (i32, i32) {
    %c0_i32 = arith.constant 0 : i32
    return %arg2, %arg1 : i32, i32
  }
  func.func @transform_2(%arg0: i32, %arg1: i32, %arg2: i32) -> (i32, i32) {
    %c0_i32 = arith.constant 0 : i32
    %c0_i32_0 = arith.constant 0 : i32
    return %c0_i32, %arg1 : i32, i32
  }
  func.func @transform_3(%arg0: i32, %arg1: i32, %arg2: i32) -> (i32, i32) {
    %c0_i32 = arith.constant 0 : i32
    return %arg0, %arg1 : i32, i32
  }
}

module attributes {stable_mosaic.version = 11 : i64} {
  func.func @_ln_linear_kernel(%arg0: i32, %arg1: i32, %arg2: memref<10x32xbf16, #tpu.memory_space<vmem>>, %arg3: memref<1x32xf32, #tpu.memory_space<vmem>>, %arg4: memref<1x32xf32, #tpu.memory_space<vmem>>, %arg5: memref<32x384xbf16, #tpu.memory_space<vmem>>, %arg6: memref<10x384xbf16, #tpu.memory_space<vmem>>) attributes {dimension_semantics = [#tpu.dimension_semantics<parallel>, #tpu.dimension_semantics<parallel>], iteration_bounds = array<i64: 1, 1>, scalar_prefetch = 0 : i64, scratch_operands = 0 : i64, tpu.core_type = #tpu.core_type<tc>, window_params = [{transform_indices = @transform_0, window_bounds = array<i64: 10, 32>}, {pipeline_mode = #tpu.pipeline_mode<synchronous>, transform_indices = @transform_1, window_bounds = array<i64: 1, 32>}, {pipeline_mode = #tpu.pipeline_mode<synchronous>, transform_indices = @transform_2, window_bounds = array<i64: 1, 32>}, {transform_indices = @transform_3, window_bounds = array<i64: 32, 384>}, {transform_indices = @transform_4, window_bounds = array<i64: 10, 384>}]} {
    %c0 = arith.constant 0 : index
    %c0_0 = arith.constant 0 : index
    %0 = vector.load %arg2[%c0, %c0_0] : memref<10x32xbf16, #tpu.memory_space<vmem>>, vector<10x32xbf16>
    %1 = arith.extf %0 : vector<10x32xbf16> to vector<10x32xf32>
    %cst = arith.constant dense<0.000000e+00> : vector<10xf32>
    %2 = vector.multi_reduction <add>, %1, %cst [1] : vector<10x32xf32> to vector<10xf32>
    %3 = vector.shape_cast %2 : vector<10xf32> to vector<10x1xf32>
    %cst_1 = arith.constant 3.200000e+01 : f32
    %4 = vector.broadcast %cst_1 : f32 to vector<10x1xf32>
    %5 = arith.divf %3, %4 : vector<10x1xf32>
    %6 = vector.broadcast %5 : vector<10x1xf32> to vector<10x32xf32>
    %7 = arith.subf %1, %6 : vector<10x32xf32>
    %8 = arith.mulf %7, %7 : vector<10x32xf32>
    %cst_2 = arith.constant dense<0.000000e+00> : vector<10xf32>
    %9 = vector.multi_reduction <add>, %8, %cst_2 [1] : vector<10x32xf32> to vector<10xf32>
    %10 = vector.shape_cast %9 : vector<10xf32> to vector<10x1xf32>
    %cst_3 = arith.constant 3.200000e+01 : f32
    %11 = vector.broadcast %cst_3 : f32 to vector<10x1xf32>
    %12 = arith.divf %10, %11 : vector<10x1xf32>
    %13 = vector.broadcast %5 : vector<10x1xf32> to vector<10x32xf32>
    %14 = arith.subf %1, %13 : vector<10x32xf32>
    %cst_4 = arith.constant 9.99999974E-6 : f32
    %15 = vector.broadcast %cst_4 : f32 to vector<10x1xf32>
    %16 = arith.addf %12, %15 : vector<10x1xf32>
    %17 = math.rsqrt %16 : vector<10x1xf32>
    %18 = vector.broadcast %17 : vector<10x1xf32> to vector<10x32xf32>
    %19 = arith.mulf %14, %18 : vector<10x32xf32>
    %c0_5 = arith.constant 0 : index
    %c0_6 = arith.constant 0 : index
    %20 = vector.load %arg3[%c0_5, %c0_6] : memref<1x32xf32, #tpu.memory_space<vmem>>, vector<1x32xf32>
    %21 = vector.broadcast %20 : vector<1x32xf32> to vector<10x32xf32>
    %22 = arith.mulf %19, %21 : vector<10x32xf32>
    %c0_7 = arith.constant 0 : index
    %c0_8 = arith.constant 0 : index
    %23 = vector.load %arg4[%c0_7, %c0_8] : memref<1x32xf32, #tpu.memory_space<vmem>>, vector<1x32xf32>
    %24 = vector.broadcast %23 : vector<1x32xf32> to vector<10x32xf32>
    %25 = arith.addf %22, %24 : vector<10x32xf32>
    %26 = arith.truncf %25 : vector<10x32xf32> to vector<10x32xbf16>
    %c0_9 = arith.constant 0 : index
    %c0_10 = arith.constant 0 : index
    %27 = vector.load %arg5[%c0_9, %c0_10] : memref<32x384xbf16, #tpu.memory_space<vmem>>, vector<32x384xbf16>
    %cst_11 = arith.constant dense<0.000000e+00> : vector<10x384xf32>
    %28 = tpu.matmul %26, %27, %cst_11 {dimension_numbers = #tpu.dot_dimension_numbers<[1], [0], [0], [1], [0, 0, 1, 1], [], []>} : vector<10x32xbf16>, vector<32x384xbf16>, vector<10x384xf32> -> vector<10x384xf32>
    %29 = arith.truncf %28 : vector<10x384xf32> to vector<10x384xbf16>
    %c0_12 = arith.constant 0 : index
    %c0_13 = arith.constant 0 : index
    %30 = vector.load %arg6[%c0_12, %c0_13] : memref<10x384xbf16, #tpu.memory_space<vmem>>, vector<10x384xbf16>
    tpu.vector_store %arg6[%c0_12, %c0_13], %29 {strides = array<i32>} : memref<10x384xbf16, #tpu.memory_space<vmem>>, vector<10x384xbf16>,
    return
  }
  func.func @transform_0(%arg0: i32, %arg1: i32) -> (i32, i32) {
    %c0_i32 = arith.constant 0 : i32
    %c0_i32_0 = arith.constant 0 : i32
    return %arg0, %c0_i32 : i32, i32
  }
  func.func @transform_1(%arg0: i32, %arg1: i32) -> (i32, i32) {
    %c0_i32 = arith.constant 0 : i32
    %c0_i32_0 = arith.constant 0 : i32
    %c0_i32_1 = arith.constant 0 : i32
    return %c0_i32, %c0_i32_0 : i32, i32
  }
  func.func @transform_2(%arg0: i32, %arg1: i32) -> (i32, i32) {
    %c0_i32 = arith.constant 0 : i32
    %c0_i32_0 = arith.constant 0 : i32
    %c0_i32_1 = arith.constant 0 : i32
    return %c0_i32, %c0_i32_0 : i32, i32
  }
  func.func @transform_3(%arg0: i32, %arg1: i32) -> (i32, i32) {
    %c0_i32 = arith.constant 0 : i32
    %c0_i32_0 = arith.constant 0 : i32
    return %c0_i32, %arg1 : i32, i32
  }
  func.func @transform_4(%arg0: i32, %arg1: i32) -> (i32, i32) {
    %c0_i32 = arith.constant 0 : i32
    return %arg0, %arg1 : i32, i32
  }
}

module attributes {stable_mosaic.version = 11 : i64} {
  func.func @_fast_attn_kernel(%arg0: i32, %arg1: i32, %arg2: memref<1x5x128xbf16, #tpu.memory_space<vmem>>, %arg3: memref<1x5x128xbf16, #tpu.memory_space<vmem>>, %arg4: memref<1x5x128xbf16, #tpu.memory_space<vmem>>, %arg5: memref<5x128xf32, #tpu.memory_space<vmem>>, %arg6: memref<5x128xf32, #tpu.memory_space<vmem>>, %arg7: memref<5x128xf32, #tpu.memory_space<vmem>>, %arg8: memref<1x128x4xbf16, #tpu.memory_space<vmem>>, %arg9: memref<1x128x4xbf16, #tpu.memory_space<vmem>>, %arg10: memref<1x4x128xbf16, #tpu.memory_space<vmem>>, %arg11: memref<1x128x128xbf16, #tpu.memory_space<vmem>>, %arg12: memref<1x128xf32, #tpu.memory_space<vmem>>, %arg13: memref<1x5x128xbf16, #tpu.memory_space<vmem>>) attributes {dimension_semantics = [#tpu.dimension_semantics<parallel>, #tpu.dimension_semantics<parallel>], iteration_bounds = array<i64: 2, 1>, scalar_prefetch = 0 : i64, scratch_operands = 0 : i64, tpu.core_type = #tpu.core_type<tc>, window_params = [{transform_indices = @transform_0, window_bounds = array<i64: 1, 5, 128>}, {transform_indices = @transform_1, window_bounds = array<i64: 1, 5, 128>}, {transform_indices = @transform_2, window_bounds = array<i64: 1, 5, 128>}, {transform_indices = @transform_3, window_bounds = array<i64: 5, 128>}, {transform_indices = @transform_4, window_bounds = array<i64: 5, 128>}, {transform_indices = @transform_5, window_bounds = array<i64: 5, 128>}, {transform_indices = @transform_6, window_bounds = array<i64: 1, 128, 4>}, {transform_indices = @transform_7, window_bounds = array<i64: 1, 128, 4>}, {transform_indices = @transform_8, window_bounds = array<i64: 1, 4, 128>}, {transform_indices = @transform_9, window_bounds = array<i64: 1, 128, 128>}, {transform_indices = @transform_10, window_bounds = array<i64: 1, 128>}, {transform_indices = @transform_11, window_bounds = array<i64: 1, 5, 128>}]} {
    %c0 = arith.constant 0 : index
    %c0_0 = arith.constant 0 : index
    %c0_1 = arith.constant 0 : index
    %0 = vector.load %arg2[%c0, %c0_0, %c0_1] : memref<1x5x128xbf16, #tpu.memory_space<vmem>>, vector<1x5x128xbf16>
    %1 = vector.shape_cast %0 : vector<1x5x128xbf16> to vector<5x128xbf16>
    %c0_2 = arith.constant 0 : index
    %c0_3 = arith.constant 0 : index
    %c0_4 = arith.constant 0 : index
    %2 = vector.load %arg3[%c0_2, %c0_3, %c0_4] : memref<1x5x128xbf16, #tpu.memory_space<vmem>>, vector<1x5x128xbf16>
    %3 = vector.shape_cast %2 : vector<1x5x128xbf16> to vector<5x128xbf16>
    %c0_5 = arith.constant 0 : index
    %c0_6 = arith.constant 0 : index
    %c0_7 = arith.constant 0 : index
    %4 = vector.load %arg4[%c0_5, %c0_6, %c0_7] : memref<1x5x128xbf16, #tpu.memory_space<vmem>>, vector<1x5x128xbf16>
    %5 = vector.shape_cast %4 : vector<1x5x128xbf16> to vector<5x128xbf16>
    %6 = arith.extf %1 : vector<5x128xbf16> to vector<5x128xf32>
    %7 = arith.extf %3 : vector<5x128xbf16> to vector<5x128xf32>
    %8 = arith.extf %5 : vector<5x128xbf16> to vector<5x128xf32>
    %c0_8 = arith.constant 0 : index
    %c0_9 = arith.constant 0 : index
    %9 = vector.load %arg5[%c0_8, %c0_9] : memref<5x128xf32, #tpu.memory_space<vmem>>, vector<5x128xf32>
    %c0_10 = arith.constant 0 : index
    %c0_11 = arith.constant 0 : index
    %10 = vector.load %arg6[%c0_10, %c0_11] : memref<5x128xf32, #tpu.memory_space<vmem>>, vector<5x128xf32>
    %c0_12 = arith.constant 0 : index
    %c0_13 = arith.constant 0 : index
    %11 = vector.load %arg7[%c0_12, %c0_13] : memref<5x128xf32, #tpu.memory_space<vmem>>, vector<5x128xf32>
    %c127_i32 = arith.constant 127 : i32
    %12 = tpu.dynamic_rotate %6 by %c127_i32 dim 1 : vector<5x128xf32>, i32 -> vector<5x128xf32>
    %c1_i32 = arith.constant 1 : i32
    %13 = tpu.dynamic_rotate %6 by %c1_i32 dim 1 : vector<5x128xf32>, i32 -> vector<5x128xf32>
    %14 = arith.mulf %6, %9 : vector<5x128xf32>
    %15 = arith.mulf %12, %10 : vector<5x128xf32>
    %16 = arith.addf %14, %15 : vector<5x128xf32>
    %17 = arith.mulf %13, %11 : vector<5x128xf32>
    %18 = arith.addf %16, %17 : vector<5x128xf32>
    %c127_i32_14 = arith.constant 127 : i32
    %19 = tpu.dynamic_rotate %7 by %c127_i32_14 dim 1 : vector<5x128xf32>, i32 -> vector<5x128xf32>
    %c1_i32_15 = arith.constant 1 : i32
    %20 = tpu.dynamic_rotate %7 by %c1_i32_15 dim 1 : vector<5x128xf32>, i32 -> vector<5x128xf32>
    %21 = arith.mulf %7, %9 : vector<5x128xf32>
    %22 = arith.mulf %19, %10 : vector<5x128xf32>
    %23 = arith.addf %21, %22 : vector<5x128xf32>
    %24 = arith.mulf %20, %11 : vector<5x128xf32>
    %25 = arith.addf %23, %24 : vector<5x128xf32>
    %c127_i32_16 = arith.constant 127 : i32
    %26 = tpu.dynamic_rotate %8 by %c127_i32_16 dim 1 : vector<5x128xf32>, i32 -> vector<5x128xf32>
    %c1_i32_17 = arith.constant 1 : i32
    %27 = tpu.dynamic_rotate %8 by %c1_i32_17 dim 1 : vector<5x128xf32>, i32 -> vector<5x128xf32>
    %28 = arith.mulf %8, %9 : vector<5x128xf32>
    %29 = arith.mulf %26, %10 : vector<5x128xf32>
    %30 = arith.addf %28, %29 : vector<5x128xf32>
    %31 = arith.mulf %27, %11 : vector<5x128xf32>
    %32 = arith.addf %30, %31 : vector<5x128xf32>
    %c0_18 = arith.constant 0 : index
    %c0_19 = arith.constant 0 : index
    %c0_20 = arith.constant 0 : index
    %33 = vector.load %arg8[%c0_18, %c0_19, %c0_20] : memref<1x128x4xbf16, #tpu.memory_space<vmem>>, vector<1x128x4xbf16>
    %34 = vector.shape_cast %33 : vector<1x128x4xbf16> to vector<128x4xbf16>
    %c0_21 = arith.constant 0 : index
    %c0_22 = arith.constant 0 : index
    %c0_23 = arith.constant 0 : index
    %35 = vector.load %arg9[%c0_21, %c0_22, %c0_23] : memref<1x128x4xbf16, #tpu.memory_space<vmem>>, vector<1x128x4xbf16>
    %36 = vector.shape_cast %35 : vector<1x128x4xbf16> to vector<128x4xbf16>
    %c0_24 = arith.constant 0 : index
    %c0_25 = arith.constant 0 : index
    %c0_26 = arith.constant 0 : index
    %37 = vector.load %arg10[%c0_24, %c0_25, %c0_26] : memref<1x4x128xbf16, #tpu.memory_space<vmem>>, vector<1x4x128xbf16>
    %38 = vector.shape_cast %37 : vector<1x4x128xbf16> to vector<4x128xbf16>
    %cst = arith.constant dense<0.000000e+00> : vector<5x4xf32>
    %39 = tpu.matmul %1, %34, %cst {dimension_numbers = #tpu.dot_dimension_numbers<[1], [0], [0], [1], [0, 0, 1, 1], [], []>} : vector<5x128xbf16>, vector<128x4xbf16>, vector<5x4xf32> -> vector<5x4xf32>
    %cst_27 = arith.constant dense<0xFF800000> : vector<4xf32>
    %40 = vector.multi_reduction <maximumf>, %39, %cst_27 [0] : vector<5x4xf32> to vector<4xf32>
    %41 = vector.shape_cast %40 : vector<4xf32> to vector<1x4xf32>
    %42 = vector.broadcast %41 : vector<1x4xf32> to vector<5x4xf32>
    %43 = arith.subf %39, %42 : vector<5x4xf32>
    %44 = math.exp %43 : vector<5x4xf32>
    %cst_28 = arith.constant dense<0.000000e+00> : vector<4xf32>
    %45 = vector.multi_reduction <add>, %44, %cst_28 [0] : vector<5x4xf32> to vector<4xf32>
    %46 = vector.shape_cast %45 : vector<4xf32> to vector<1x4xf32>
    %47 = tpu.reciprocal %46 {approx = true} : vector<1x4xf32> -> vector<1x4xf32>
    %48 = vector.broadcast %47 : vector<1x4xf32> to vector<5x4xf32>
    %49 = arith.mulf %44, %48 : vector<5x4xf32>
    %50 = arith.truncf %49 : vector<5x4xf32> to vector<5x4xbf16>
    %cst_29 = arith.constant dense<0.000000e+00> : vector<5x128xf32>
    %51 = tpu.matmul %50, %38, %cst_29 {dimension_numbers = #tpu.dot_dimension_numbers<[1], [0], [0], [1], [0, 0, 1, 1], [], []>} : vector<5x4xbf16>, vector<4x128xbf16>, vector<5x128xf32> -> vector<5x128xf32>
    %52 = arith.mulf %51, %18 : vector<5x128xf32>
    %cst_30 = arith.constant dense<0.000000e+00> : vector<128xf32>
    %53 = vector.multi_reduction <add>, %52, %cst_30 [0] : vector<5x128xf32> to vector<128xf32>
    %54 = vector.shape_cast %53 : vector<128xf32> to vector<1x128xf32>
    %55 = vector.broadcast %54 : vector<1x128xf32> to vector<5x128xf32>
    %56 = arith.mulf %7, %55 : vector<5x128xf32>
    %57 = arith.truncf %56 : vector<5x128xf32> to vector<5x128xbf16>
    %cst_31 = arith.constant dense<0.000000e+00> : vector<5x4xf32>
    %58 = tpu.matmul %57, %36, %cst_31 {dimension_numbers = #tpu.dot_dimension_numbers<[1], [0], [0], [1], [0, 0, 1, 1], [], []>} : vector<5x128xbf16>, vector<128x4xbf16>, vector<5x4xf32> -> vector<5x4xf32>
    %cst_32 = arith.constant dense<0xFF800000> : vector<4xf32>
    %59 = vector.multi_reduction <maximumf>, %58, %cst_32 [0] : vector<5x4xf32> to vector<4xf32>
    %60 = vector.shape_cast %59 : vector<4xf32> to vector<1x4xf32>
    %61 = vector.broadcast %60 : vector<1x4xf32> to vector<5x4xf32>
    %62 = arith.subf %58, %61 : vector<5x4xf32>
    %63 = math.exp %62 : vector<5x4xf32>
    %cst_33 = arith.constant dense<0.000000e+00> : vector<4xf32>
    %64 = vector.multi_reduction <add>, %63, %cst_33 [0] : vector<5x4xf32> to vector<4xf32>
    %65 = vector.shape_cast %64 : vector<4xf32> to vector<1x4xf32>
    %66 = tpu.reciprocal %65 {approx = true} : vector<1x4xf32> -> vector<1x4xf32>
    %67 = vector.broadcast %66 : vector<1x4xf32> to vector<5x4xf32>
    %68 = arith.mulf %63, %67 : vector<5x4xf32>
    %69 = arith.truncf %68 : vector<5x4xf32> to vector<5x4xbf16>
    %cst_34 = arith.constant dense<0.000000e+00> : vector<5x128xf32>
    %70 = tpu.matmul %69, %38, %cst_34 {dimension_numbers = #tpu.dot_dimension_numbers<[1], [0], [0], [1], [0, 0, 1, 1], [], []>} : vector<5x4xbf16>, vector<4x128xbf16>, vector<5x128xf32> -> vector<5x128xf32>
    %71 = arith.mulf %70, %25 : vector<5x128xf32>
    %cst_35 = arith.constant dense<0.000000e+00> : vector<128xf32>
    %72 = vector.multi_reduction <add>, %71, %cst_35 [0] : vector<5x128xf32> to vector<128xf32>
    %73 = vector.shape_cast %72 : vector<128xf32> to vector<1x128xf32>
    %74 = vector.broadcast %73 : vector<1x128xf32> to vector<5x128xf32>
    %75 = arith.mulf %32, %74 : vector<5x128xf32>
    %76 = arith.truncf %75 : vector<5x128xf32> to vector<5x128xbf16>
    %c0_36 = arith.constant 0 : index
    %c0_37 = arith.constant 0 : index
    %c0_38 = arith.constant 0 : index
    %77 = vector.load %arg11[%c0_36, %c0_37, %c0_38] : memref<1x128x128xbf16, #tpu.memory_space<vmem>>, vector<1x128x128xbf16>
    %78 = vector.shape_cast %77 : vector<1x128x128xbf16> to vector<128x128xbf16>
    %cst_39 = arith.constant dense<0.000000e+00> : vector<5x128xf32>
    %79 = tpu.matmul %76, %78, %cst_39 {dimension_numbers = #tpu.dot_dimension_numbers<[1], [0], [0], [1], [0, 0, 1, 1], [], []>} : vector<5x128xbf16>, vector<128x128xbf16>, vector<5x128xf32> -> vector<5x128xf32>
    %c0_40 = arith.constant 0 : index
    %c0_41 = arith.constant 0 : index
    %80 = vector.load %arg12[%c0_40, %c0_41] : memref<1x128xf32, #tpu.memory_space<vmem>>, vector<1x128xf32>
    %81 = vector.broadcast %80 : vector<1x128xf32> to vector<5x128xf32>
    %82 = arith.addf %79, %81 : vector<5x128xf32>
    %83 = arith.addf %82, %6 : vector<5x128xf32>
    %84 = arith.truncf %83 : vector<5x128xf32> to vector<5x128xbf16>
    %c0_42 = arith.constant 0 : index
    %c0_43 = arith.constant 0 : index
    %c0_44 = arith.constant 0 : index
    %85 = vector.load %arg13[%c0_42, %c0_43, %c0_44] : memref<1x5x128xbf16, #tpu.memory_space<vmem>>, vector<1x5x128xbf16>
    %86 = vector.shape_cast %85 : vector<1x5x128xbf16> to vector<5x128xbf16>
    %87 = vector.shape_cast %84 : vector<5x128xbf16> to vector<1x5x128xbf16>
    tpu.vector_store %arg13[%c0_42, %c0_43, %c0_44], %87 {strides = array<i32>} : memref<1x5x128xbf16, #tpu.memory_space<vmem>>, vector<1x5x128xbf16>,
    return
  }
  func.func @transform_0(%arg0: i32, %arg1: i32) -> (i32, i32, i32) {
    %c0_i32 = arith.constant 0 : i32
    %0 = arith.addi %c0_i32, %arg1 : i32
    %c0_i32_0 = arith.constant 0 : i32
    %c0_i32_1 = arith.constant 0 : i32
    return %arg0, %c0_i32_0, %0 : i32, i32, i32
  }
  func.func @transform_1(%arg0: i32, %arg1: i32) -> (i32, i32, i32) {
    %c1_i32 = arith.constant 1 : i32
    %0 = arith.addi %c1_i32, %arg1 : i32
    %c0_i32 = arith.constant 0 : i32
    %c0_i32_0 = arith.constant 0 : i32
    return %arg0, %c0_i32, %0 : i32, i32, i32
  }
  func.func @transform_2(%arg0: i32, %arg1: i32) -> (i32, i32, i32) {
    %c2_i32 = arith.constant 2 : i32
    %0 = arith.addi %c2_i32, %arg1 : i32
    %c0_i32 = arith.constant 0 : i32
    %c0_i32_0 = arith.constant 0 : i32
    return %arg0, %c0_i32, %0 : i32, i32, i32
  }
  func.func @transform_3(%arg0: i32, %arg1: i32) -> (i32, i32) {
    %c0_i32 = arith.constant 0 : i32
    %c0_i32_0 = arith.constant 0 : i32
    return %c0_i32, %arg1 : i32, i32
  }
  func.func @transform_4(%arg0: i32, %arg1: i32) -> (i32, i32) {
    %c0_i32 = arith.constant 0 : i32
    %c0_i32_0 = arith.constant 0 : i32
    return %c0_i32, %arg1 : i32, i32
  }
  func.func @transform_5(%arg0: i32, %arg1: i32) -> (i32, i32) {
    %c0_i32 = arith.constant 0 : i32
    %c0_i32_0 = arith.constant 0 : i32
    return %c0_i32, %arg1 : i32, i32
  }
  func.func @transform_6(%arg0: i32, %arg1: i32) -> (i32, i32, i32) {
    %c0_i32 = arith.constant 0 : i32
    %c0_i32_0 = arith.constant 0 : i32
    %c0_i32_1 = arith.constant 0 : i32
    return %arg1, %c0_i32, %c0_i32_0 : i32, i32, i32
  }
  func.func @transform_7(%arg0: i32, %arg1: i32) -> (i32, i32, i32) {
    %c0_i32 = arith.constant 0 : i32
    %c0_i32_0 = arith.constant 0 : i32
    %c0_i32_1 = arith.constant 0 : i32
    return %arg1, %c0_i32, %c0_i32_0 : i32, i32, i32
  }
  func.func @transform_8(%arg0: i32, %arg1: i32) -> (i32, i32, i32) {
    %c0_i32 = arith.constant 0 : i32
    %c0_i32_0 = arith.constant 0 : i32
    %c0_i32_1 = arith.constant 0 : i32
    return %arg1, %c0_i32, %c0_i32_0 : i32, i32, i32
  }
  func.func @transform_9(%arg0: i32, %arg1: i32) -> (i32, i32, i32) {
    %c0_i32 = arith.constant 0 : i32
    %c0_i32_0 = arith.constant 0 : i32
    %c0_i32_1 = arith.constant 0 : i32
    return %arg1, %c0_i32, %c0_i32_0 : i32, i32, i32
  }
  func.func @transform_10(%arg0: i32, %arg1: i32) -> (i32, i32) {
    %c0_i32 = arith.constant 0 : i32
    %c0_i32_0 = arith.constant 0 : i32
    return %c0_i32, %arg1 : i32, i32
  }
  func.func @transform_11(%arg0: i32, %arg1: i32) -> (i32, i32, i32) {
    %c0_i32 = arith.constant 0 : i32
    %c0_i32_0 = arith.constant 0 : i32
    return %arg0, %c0_i32, %arg1 : i32, i32, i32
  }
}

module attributes {stable_mosaic.version = 11 : i64} {
  func.func @_linear_kernel(%arg0: i32, %arg1: i32, %arg2: i32, %arg3: memref<10x128xbf16, #tpu.memory_space<vmem>>, %arg4: memref<128x32xbf16, #tpu.memory_space<vmem>>, %arg5: memref<1x32xf32, #tpu.memory_space<vmem>>, %arg6: memref<10x32xbf16, #tpu.memory_space<vmem>>, %arg7: memref<10x32xbf16, #tpu.memory_space<vmem>>) attributes {dimension_semantics = [#tpu.dimension_semantics<parallel>, #tpu.dimension_semantics<parallel>, #tpu.dimension_semantics<arbitrary>], iteration_bounds = array<i64: 1, 1, 1>, scalar_prefetch = 0 : i64, scratch_operands = 0 : i64, tpu.core_type = #tpu.core_type<tc>, window_params = [{transform_indices = @transform_0, window_bounds = array<i64: 10, 128>}, {transform_indices = @transform_1, window_bounds = array<i64: 128, 32>}, {transform_indices = @transform_2, window_bounds = array<i64: 1, 32>}, {transform_indices = @transform_3, window_bounds = array<i64: 10, 32>}, {transform_indices = @transform_4, window_bounds = array<i64: 10, 32>}]} {
    %c0 = arith.constant 0 : index
    %c0_0 = arith.constant 0 : index
    %0 = vector.load %arg3[%c0, %c0_0] : memref<10x128xbf16, #tpu.memory_space<vmem>>, vector<10x128xbf16>
    %c0_1 = arith.constant 0 : index
    %c0_2 = arith.constant 0 : index
    %1 = vector.load %arg4[%c0_1, %c0_2] : memref<128x32xbf16, #tpu.memory_space<vmem>>, vector<128x32xbf16>
    %cst = arith.constant dense<0.000000e+00> : vector<10x32xf32>
    %2 = tpu.matmul %0, %1, %cst {dimension_numbers = #tpu.dot_dimension_numbers<[1], [0], [0], [1], [0, 0, 1, 1], [], []>} : vector<10x128xbf16>, vector<128x32xbf16>, vector<10x32xf32> -> vector<10x32xf32>
    %c0_3 = arith.constant 0 : index
    %c0_4 = arith.constant 0 : index
    %3 = vector.load %arg5[%c0_3, %c0_4] : memref<1x32xf32, #tpu.memory_space<vmem>>, vector<1x32xf32>
    %4 = vector.broadcast %3 : vector<1x32xf32> to vector<10x32xf32>
    %5 = arith.addf %2, %4 : vector<10x32xf32>
    %c0_5 = arith.constant 0 : index
    %c0_6 = arith.constant 0 : index
    %6 = vector.load %arg6[%c0_5, %c0_6] : memref<10x32xbf16, #tpu.memory_space<vmem>>, vector<10x32xbf16>
    %7 = arith.extf %6 : vector<10x32xbf16> to vector<10x32xf32>
    %8 = arith.addf %5, %7 : vector<10x32xf32>
    %9 = arith.truncf %8 : vector<10x32xf32> to vector<10x32xbf16>
    %c0_7 = arith.constant 0 : index
    %c0_8 = arith.constant 0 : index
    %10 = vector.load %arg7[%c0_7, %c0_8] : memref<10x32xbf16, #tpu.memory_space<vmem>>, vector<10x32xbf16>
    tpu.vector_store %arg7[%c0_7, %c0_8], %9 {strides = array<i32>} : memref<10x32xbf16, #tpu.memory_space<vmem>>, vector<10x32xbf16>,
    return
  }
  func.func @transform_0(%arg0: i32, %arg1: i32, %arg2: i32) -> (i32, i32) {
    %c0_i32 = arith.constant 0 : i32
    return %arg0, %arg2 : i32, i32
  }
  func.func @transform_1(%arg0: i32, %arg1: i32, %arg2: i32) -> (i32, i32) {
    %c0_i32 = arith.constant 0 : i32
    return %arg2, %arg1 : i32, i32
  }
  func.func @transform_2(%arg0: i32, %arg1: i32, %arg2: i32) -> (i32, i32) {
    %c0_i32 = arith.constant 0 : i32
    %c0_i32_0 = arith.constant 0 : i32
    return %c0_i32, %arg1 : i32, i32
  }
  func.func @transform_3(%arg0: i32, %arg1: i32, %arg2: i32) -> (i32, i32) {
    %c0_i32 = arith.constant 0 : i32
    return %arg0, %arg1 : i32, i32
  }
  func.func @transform_4(%arg0: i32, %arg1: i32, %arg2: i32) -> (i32, i32) {
    %c0_i32 = arith.constant 0 : i32
    return %arg0, %arg1 : i32, i32
  }
}

module attributes {stable_mosaic.version = 11 : i64} {
  func.func @_ln_linear_kernel(%arg0: i32, %arg1: i32, %arg2: memref<10x32xbf16, #tpu.memory_space<vmem>>, %arg3: memref<1x32xf32, #tpu.memory_space<vmem>>, %arg4: memref<1x32xf32, #tpu.memory_space<vmem>>, %arg5: memref<32x128xbf16, #tpu.memory_space<vmem>>, %arg6: memref<1x128xf32, #tpu.memory_space<vmem>>, %arg7: memref<10x128xbf16, #tpu.memory_space<vmem>>) attributes {dimension_semantics = [#tpu.dimension_semantics<parallel>, #tpu.dimension_semantics<parallel>], iteration_bounds = array<i64: 1, 1>, scalar_prefetch = 0 : i64, scratch_operands = 0 : i64, tpu.core_type = #tpu.core_type<tc>, window_params = [{transform_indices = @transform_0, window_bounds = array<i64: 10, 32>}, {pipeline_mode = #tpu.pipeline_mode<synchronous>, transform_indices = @transform_1, window_bounds = array<i64: 1, 32>}, {pipeline_mode = #tpu.pipeline_mode<synchronous>, transform_indices = @transform_2, window_bounds = array<i64: 1, 32>}, {transform_indices = @transform_3, window_bounds = array<i64: 32, 128>}, {transform_indices = @transform_4, window_bounds = array<i64: 1, 128>}, {transform_indices = @transform_5, window_bounds = array<i64: 10, 128>}]} {
    %c0 = arith.constant 0 : index
    %c0_0 = arith.constant 0 : index
    %0 = vector.load %arg2[%c0, %c0_0] : memref<10x32xbf16, #tpu.memory_space<vmem>>, vector<10x32xbf16>
    %1 = arith.extf %0 : vector<10x32xbf16> to vector<10x32xf32>
    %cst = arith.constant dense<0.000000e+00> : vector<10xf32>
    %2 = vector.multi_reduction <add>, %1, %cst [1] : vector<10x32xf32> to vector<10xf32>
    %3 = vector.shape_cast %2 : vector<10xf32> to vector<10x1xf32>
    %cst_1 = arith.constant 3.200000e+01 : f32
    %4 = vector.broadcast %cst_1 : f32 to vector<10x1xf32>
    %5 = arith.divf %3, %4 : vector<10x1xf32>
    %6 = vector.broadcast %5 : vector<10x1xf32> to vector<10x32xf32>
    %7 = arith.subf %1, %6 : vector<10x32xf32>
    %8 = arith.mulf %7, %7 : vector<10x32xf32>
    %cst_2 = arith.constant dense<0.000000e+00> : vector<10xf32>
    %9 = vector.multi_reduction <add>, %8, %cst_2 [1] : vector<10x32xf32> to vector<10xf32>
    %10 = vector.shape_cast %9 : vector<10xf32> to vector<10x1xf32>
    %cst_3 = arith.constant 3.200000e+01 : f32
    %11 = vector.broadcast %cst_3 : f32 to vector<10x1xf32>
    %12 = arith.divf %10, %11 : vector<10x1xf32>
    %13 = vector.broadcast %5 : vector<10x1xf32> to vector<10x32xf32>
    %14 = arith.subf %1, %13 : vector<10x32xf32>
    %cst_4 = arith.constant 9.99999974E-6 : f32
    %15 = vector.broadcast %cst_4 : f32 to vector<10x1xf32>
    %16 = arith.addf %12, %15 : vector<10x1xf32>
    %17 = math.rsqrt %16 : vector<10x1xf32>
    %18 = vector.broadcast %17 : vector<10x1xf32> to vector<10x32xf32>
    %19 = arith.mulf %14, %18 : vector<10x32xf32>
    %c0_5 = arith.constant 0 : index
    %c0_6 = arith.constant 0 : index
    %20 = vector.load %arg3[%c0_5, %c0_6] : memref<1x32xf32, #tpu.memory_space<vmem>>, vector<1x32xf32>
    %21 = vector.broadcast %20 : vector<1x32xf32> to vector<10x32xf32>
    %22 = arith.mulf %19, %21 : vector<10x32xf32>
    %c0_7 = arith.constant 0 : index
    %c0_8 = arith.constant 0 : index
    %23 = vector.load %arg4[%c0_7, %c0_8] : memref<1x32xf32, #tpu.memory_space<vmem>>, vector<1x32xf32>
    %24 = vector.broadcast %23 : vector<1x32xf32> to vector<10x32xf32>
    %25 = arith.addf %22, %24 : vector<10x32xf32>
    %26 = arith.truncf %25 : vector<10x32xf32> to vector<10x32xbf16>
    %c0_9 = arith.constant 0 : index
    %c0_10 = arith.constant 0 : index
    %27 = vector.load %arg5[%c0_9, %c0_10] : memref<32x128xbf16, #tpu.memory_space<vmem>>, vector<32x128xbf16>
    %cst_11 = arith.constant dense<0.000000e+00> : vector<10x128xf32>
    %28 = tpu.matmul %26, %27, %cst_11 {dimension_numbers = #tpu.dot_dimension_numbers<[1], [0], [0], [1], [0, 0, 1, 1], [], []>} : vector<10x32xbf16>, vector<32x128xbf16>, vector<10x128xf32> -> vector<10x128xf32>
    %c0_12 = arith.constant 0 : index
    %c0_13 = arith.constant 0 : index
    %29 = vector.load %arg6[%c0_12, %c0_13] : memref<1x128xf32, #tpu.memory_space<vmem>>, vector<1x128xf32>
    %30 = vector.broadcast %29 : vector<1x128xf32> to vector<10x128xf32>
    %31 = arith.addf %28, %30 : vector<10x128xf32>
    %cst_14 = arith.constant 5.000000e-01 : f32
    %32 = vector.broadcast %cst_14 : f32 to vector<10x128xf32>
    %33 = arith.mulf %32, %31 : vector<10x128xf32>
    %cst_15 = arith.constant 0.707106769 : f32
    %34 = vector.broadcast %cst_15 : f32 to vector<10x128xf32>
    %35 = arith.mulf %31, %34 : vector<10x128xf32>
    %36 = math.erf %35 : vector<10x128xf32>
    %cst_16 = arith.constant 1.000000e+00 : f32
    %37 = vector.broadcast %cst_16 : f32 to vector<10x128xf32>
    %38 = arith.addf %37, %36 : vector<10x128xf32>
    %39 = arith.mulf %33, %38 : vector<10x128xf32>
    %40 = arith.truncf %39 : vector<10x128xf32> to vector<10x128xbf16>
    %c0_17 = arith.constant 0 : index
    %c0_18 = arith.constant 0 : index
    %41 = vector.load %arg7[%c0_17, %c0_18] : memref<10x128xbf16, #tpu.memory_space<vmem>>, vector<10x128xbf16>
    tpu.vector_store %arg7[%c0_17, %c0_18], %40 {strides = array<i32>} : memref<10x128xbf16, #tpu.memory_space<vmem>>, vector<10x128xbf16>,
    return
  }
  func.func @transform_0(%arg0: i32, %arg1: i32) -> (i32, i32) {
    %c0_i32 = arith.constant 0 : i32
    %c0_i32_0 = arith.constant 0 : i32
    return %arg0, %c0_i32 : i32, i32
  }
  func.func @transform_1(%arg0: i32, %arg1: i32) -> (i32, i32) {
    %c0_i32 = arith.constant 0 : i32
    %c0_i32_0 = arith.constant 0 : i32
    %c0_i32_1 = arith.constant 0 : i32
    return %c0_i32, %c0_i32_0 : i32, i32
  }
  func.func @transform_2(%arg0: i32, %arg1: i32) -> (i32, i32) {
    %c0_i32 = arith.constant 0 : i32
    %c0_i32_0 = arith.constant 0 : i32
    %c0_i32_1 = arith.constant 0 : i32
    return %c0_i32, %c0_i32_0 : i32, i32
  }
  func.func @transform_3(%arg0: i32, %arg1: i32) -> (i32, i32) {
    %c0_i32 = arith.constant 0 : i32
    %c0_i32_0 = arith.constant 0 : i32
    return %c0_i32, %arg1 : i32, i32
  }
  func.func @transform_4(%arg0: i32, %arg1: i32) -> (i32, i32) {
    %c0_i32 = arith.constant 0 : i32
    %c0_i32_0 = arith.constant 0 : i32
    return %c0_i32, %arg1 : i32, i32
  }
  func.func @transform_5(%arg0: i32, %arg1: i32) -> (i32, i32) {
    %c0_i32 = arith.constant 0 : i32
    return %arg0, %arg1 : i32, i32
  }
}

module attributes {stable_mosaic.version = 11 : i64} {
  func.func @_ln_linear_kernel(%arg0: i32, %arg1: i32, %arg2: memref<2x32xbf16, #tpu.memory_space<vmem>>, %arg3: memref<1x32xf32, #tpu.memory_space<vmem>>, %arg4: memref<1x32xf32, #tpu.memory_space<vmem>>, %arg5: memref<32x10xbf16, #tpu.memory_space<vmem>>, %arg6: memref<1x10xf32, #tpu.memory_space<vmem>>, %arg7: memref<2x10xf32, #tpu.memory_space<vmem>>) attributes {dimension_semantics = [#tpu.dimension_semantics<parallel>, #tpu.dimension_semantics<parallel>], iteration_bounds = array<i64: 1, 1>, scalar_prefetch = 0 : i64, scratch_operands = 0 : i64, tpu.core_type = #tpu.core_type<tc>, window_params = [{transform_indices = @transform_0, window_bounds = array<i64: 2, 32>}, {pipeline_mode = #tpu.pipeline_mode<synchronous>, transform_indices = @transform_1, window_bounds = array<i64: 1, 32>}, {pipeline_mode = #tpu.pipeline_mode<synchronous>, transform_indices = @transform_2, window_bounds = array<i64: 1, 32>}, {transform_indices = @transform_3, window_bounds = array<i64: 32, 10>}, {transform_indices = @transform_4, window_bounds = array<i64: 1, 10>}, {transform_indices = @transform_5, window_bounds = array<i64: 2, 10>}]} {
    %c0 = arith.constant 0 : index
    %c0_0 = arith.constant 0 : index
    %0 = vector.load %arg2[%c0, %c0_0] : memref<2x32xbf16, #tpu.memory_space<vmem>>, vector<2x32xbf16>
    %1 = arith.extf %0 : vector<2x32xbf16> to vector<2x32xf32>
    %cst = arith.constant dense<0.000000e+00> : vector<2xf32>
    %2 = vector.multi_reduction <add>, %1, %cst [1] : vector<2x32xf32> to vector<2xf32>
    %3 = vector.shape_cast %2 : vector<2xf32> to vector<2x1xf32>
    %cst_1 = arith.constant 3.200000e+01 : f32
    %4 = vector.broadcast %cst_1 : f32 to vector<2x1xf32>
    %5 = arith.divf %3, %4 : vector<2x1xf32>
    %6 = vector.broadcast %5 : vector<2x1xf32> to vector<2x32xf32>
    %7 = arith.subf %1, %6 : vector<2x32xf32>
    %8 = arith.mulf %7, %7 : vector<2x32xf32>
    %cst_2 = arith.constant dense<0.000000e+00> : vector<2xf32>
    %9 = vector.multi_reduction <add>, %8, %cst_2 [1] : vector<2x32xf32> to vector<2xf32>
    %10 = vector.shape_cast %9 : vector<2xf32> to vector<2x1xf32>
    %cst_3 = arith.constant 3.200000e+01 : f32
    %11 = vector.broadcast %cst_3 : f32 to vector<2x1xf32>
    %12 = arith.divf %10, %11 : vector<2x1xf32>
    %13 = vector.broadcast %5 : vector<2x1xf32> to vector<2x32xf32>
    %14 = arith.subf %1, %13 : vector<2x32xf32>
    %cst_4 = arith.constant 9.99999974E-6 : f32
    %15 = vector.broadcast %cst_4 : f32 to vector<2x1xf32>
    %16 = arith.addf %12, %15 : vector<2x1xf32>
    %17 = math.rsqrt %16 : vector<2x1xf32>
    %18 = vector.broadcast %17 : vector<2x1xf32> to vector<2x32xf32>
    %19 = arith.mulf %14, %18 : vector<2x32xf32>
    %c0_5 = arith.constant 0 : index
    %c0_6 = arith.constant 0 : index
    %20 = vector.load %arg3[%c0_5, %c0_6] : memref<1x32xf32, #tpu.memory_space<vmem>>, vector<1x32xf32>
    %21 = vector.broadcast %20 : vector<1x32xf32> to vector<2x32xf32>
    %22 = arith.mulf %19, %21 : vector<2x32xf32>
    %c0_7 = arith.constant 0 : index
    %c0_8 = arith.constant 0 : index
    %23 = vector.load %arg4[%c0_7, %c0_8] : memref<1x32xf32, #tpu.memory_space<vmem>>, vector<1x32xf32>
    %24 = vector.broadcast %23 : vector<1x32xf32> to vector<2x32xf32>
    %25 = arith.addf %22, %24 : vector<2x32xf32>
    %26 = arith.truncf %25 : vector<2x32xf32> to vector<2x32xbf16>
    %c0_9 = arith.constant 0 : index
    %c0_10 = arith.constant 0 : index
    %27 = vector.load %arg5[%c0_9, %c0_10] : memref<32x10xbf16, #tpu.memory_space<vmem>>, vector<32x10xbf16>
    %cst_11 = arith.constant dense<0.000000e+00> : vector<2x10xf32>
    %28 = tpu.matmul %26, %27, %cst_11 {dimension_numbers = #tpu.dot_dimension_numbers<[1], [0], [0], [1], [0, 0, 1, 1], [], []>} : vector<2x32xbf16>, vector<32x10xbf16>, vector<2x10xf32> -> vector<2x10xf32>
    %c0_12 = arith.constant 0 : index
    %c0_13 = arith.constant 0 : index
    %29 = vector.load %arg6[%c0_12, %c0_13] : memref<1x10xf32, #tpu.memory_space<vmem>>, vector<1x10xf32>
    %30 = vector.broadcast %29 : vector<1x10xf32> to vector<2x10xf32>
    %31 = arith.addf %28, %30 : vector<2x10xf32>
    %c0_14 = arith.constant 0 : index
    %c0_15 = arith.constant 0 : index
    %32 = vector.load %arg7[%c0_14, %c0_15] : memref<2x10xf32, #tpu.memory_space<vmem>>, vector<2x10xf32>
    tpu.vector_store %arg7[%c0_14, %c0_15], %31 {strides = array<i32>} : memref<2x10xf32, #tpu.memory_space<vmem>>, vector<2x10xf32>,
    return
  }
  func.func @transform_0(%arg0: i32, %arg1: i32) -> (i32, i32) {
    %c0_i32 = arith.constant 0 : i32
    %c0_i32_0 = arith.constant 0 : i32
    return %arg0, %c0_i32 : i32, i32
  }
  func.func @transform_1(%arg0: i32, %arg1: i32) -> (i32, i32) {
    %c0_i32 = arith.constant 0 : i32
    %c0_i32_0 = arith.constant 0 : i32
    %c0_i32_1 = arith.constant 0 : i32
    return %c0_i32, %c0_i32_0 : i32, i32
  }
  func.func @transform_2(%arg0: i32, %arg1: i32) -> (i32, i32) {
    %c0_i32 = arith.constant 0 : i32
    %c0_i32_0 = arith.constant 0 : i32
    %c0_i32_1 = arith.constant 0 : i32
    return %c0_i32, %c0_i32_0 : i32, i32
  }
  func.func @transform_3(%arg0: i32, %arg1: i32) -> (i32, i32) {
    %c0_i32 = arith.constant 0 : i32
    %c0_i32_0 = arith.constant 0 : i32
    return %c0_i32, %arg1 : i32, i32
  }
  func.func @transform_4(%arg0: i32, %arg1: i32) -> (i32, i32) {
    %c0_i32 = arith.constant 0 : i32
    %c0_i32_0 = arith.constant 0 : i32
    return %c0_i32, %arg1 : i32, i32
  }
  func.func @transform_5(%arg0: i32, %arg1: i32) -> (i32, i32) {
    %c0_i32 = arith.constant 0 : i32
    return %arg0, %arg1 : i32, i32
  }
}

</mosaic_0001>

<bundles_post_ra>
// kernel: fast_transformer_forward.12
= control target key start
LH: loop header
LB: loop body
LE: loop exit
PB: predicated region body
PF: predicated region fallthrough
CT: control target
= control target key end

     0   :  { %v207_v0 = vmov 0   ;;  %vm125_vm0 = vcmask 523264   ;;  %vm170_vm1 = vcmask 257024   ;;  %s273_s1 = inlined_call_operand.vmem [shape: bf16[192,32], index: 1, kind: input, shape index: {}]   ;;  %s274_s0 = inlined_call_operand.vmem [shape: bf16[8,192], index: 0, kind: input, shape index: {}]   ;;  %s275_s2 = inlined_call_operand.vmem [shape: f32[1,32], index: 2, kind: input, shape index: {}]   ;;  %s276_s3 = inlined_call_operand.vmem [shape: bf16[8,32], index: 3, kind: output, shape index: {}]  }
   0x1   :  { %129 = vmatprep.subr.bf16.mxu0 %v207_v0  ;;  %v193_v1 = vld [vmem:[%s273_s1 + $0x38] sm:$0xff]   ;;  %v194_v2 = vld [vmem:[%s273_s1 + $0x30] sm:$0xff]   ;;  %v195_v3 = vld [vmem:[%s273_s1 + $0x28] sm:$0xff]  }
   0x2   :  { %130 = vmatpush1.bf16.msra.mxu0 %v193_v1  ;;  %v196_v4 = vld [vmem:[%s273_s1 + $0x20] sm:$0xff]   ;;  %v197_v7 = vld [vmem:[%s273_s1 + $0x18] sm:$0xff]   ;;  %v198_v8 = vld [vmem:[%s273_s1 + $0x10] sm:$0xff]  }
   0x3   :  { %131 = vmatprep.subr.bf16.mxu0 %v207_v0  ;;  %v15_v5 = vld [vmem:[%s274_s0] sm:$0xff]  ;;  %v199_v9 = vld [vmem:[%s273_s1 + $0x8] sm:$0xff]   ;;  %v201_v11 = vld [vmem:[%s273_s1 + $0x58] sm:$0xff]  }
   0x4   :  { %v178_v6 = vcombine.high %v15_v5, %v15_v5  ;;  %v200_v10 = vld [vmem:[%s273_s1] sm:$0xff]   ;;  %v202_v12 = vld [vmem:[%s273_s1 + $0x50] sm:$0xff]   ;;  %v203_v13 = vld [vmem:[%s273_s1 + $0x48] sm:$0xff]   ;;  %v177_v15 = vcombine.low %v15_v5, %v15_v5 }
   0x5   :  { %v204_v14 = vld [vmem:[%s273_s1 + $0x40] sm:$0xff]  }
   0x6   :  { %132 = vmatpush1.bf16.msra.mxu0 %v194_v2  ;;  %191 = vmatprep.mubr.msk.bf16.mxu0 %vm125_vm0, %v178_v6  ;;  %v176_v16 = vld [vmem:[%s275_s2] ss:$0 sm:$0xff] }
   0x7   :  { %133 = vmatprep.subr.bf16.mxu0 %v207_v0 }
   0xa   :  { %134 = vmatpush1.bf16.msra.mxu0 %v195_v3 }
   0xb   :  { %135 = vmatprep.subr.bf16.mxu0 %v207_v0 }
   0xe   :  { %136 = vmatpush1.bf16.msra.mxu0 %v196_v4 }
   0xf   :  { %137 = vmatprep.subr.bf16.mxu0 %v207_v0 }
  0x12   :  { %138 = vmatpush1.bf16.msra.mxu0 %v197_v7 }
  0x13   :  { %139 = vmatprep.subr.bf16.mxu0 %v207_v0 }
  0x16   :  { %140 = vmatpush1.bf16.msra.mxu0 %v198_v8 }
  0x17   :  { %141 = vmatprep.subr.bf16.mxu0 %v207_v0 }
  0x1a   :  { %142 = vmatpush1.bf16.msra.mxu0 %v199_v9 }
  0x1b   :  { %143 = vmatprep.subr.bf16.mxu0 %v207_v0 }
  0x1e   :  { %144 = vmatpush1.bf16.msra.mxu0 %v200_v10 }
  0x1f   :  { %153 = vmatprep.subr.bf16.mxu0 %v207_v0 }
  0x22   :  { %154 = vmatpush2.bf16.msra.mxu0 %v201_v11 }
  0x23   :  { %155 = vmatprep.subr.bf16.mxu0 %v207_v0 }
  0x26   :  { %156 = vmatpush2.bf16.msra.mxu0 %v202_v12 }
  0x27   :  { %157 = vmatprep.subr.bf16.mxu0 %v207_v0 }
  0x2a   :  { %158 = vmatpush2.bf16.msra.mxu0 %v203_v13 }
  0x2b   :  { %159 = vmatprep.subr.bf16.mxu0 %v207_v0 }
  0x2e   :  { %160 = vmatpush2.bf16.msra.mxu0 %v204_v14 }
  0x31   :  { %162 = vmatmul.mubr.bf16.vlgmr.msra.gmra.mxu0 %v177_v15 }
  0xf1   :  { %v163_v17 = vpop.f32.mrf.mxu0 }
  0xf2   :  { %v164_v18 = vadd.f32 %v176_v16, %v163_v17 }
  0xf3   :  { %v165_v19 = vpop.f32.mrf.mxu0 }
  0xf4   :  { %v169_v20 = vpack.c.bf16 %v164_v18, %v164_v18 }
  0xf5   :  { %v166_v21 = vpop.f32.mrf.mxu0 }
  0xf6   :  { %171 = vst.msk [vmem:[%s276_s3] sm:$0xf] %vm170_vm1, %v169_v20 }
  0xf7   :  { %v167_v22 = vpop.f32.mrf.mxu0 }

// kernel: fast_transformer_forward.13
= control target key start
LH: loop header
LB: loop body
LE: loop exit
PB: predicated region body
PF: predicated region fallthrough
CT: control target
= control target key end

     0   :  { %vm22_vm0 = vcmask 261120   ;;  %vm26_vm1 = vcmask 254976   ;;  %v269_v17 = vmov 0.0   ;;  %v270_v18 = vmov 0   ;;  %s343_s0 = inlined_call_operand.vmem [shape: bf16[10,32], index: 0, kind: input, shape index: {}]   ;;  %s344_s3 = inlined_call_operand.vmem [shape: bf16[32,384], index: 3, kind: input, shape index: {}]   ;;  %s345_s1 = inlined_call_operand.vmem [shape: f32[1,32], index: 1, kind: input, shape index: {}]   ;;  %s346_s2 = inlined_call_operand.vmem [shape: f32[1,32], index: 2, kind: input, shape index: {}]   ;;  %s347_s4 = inlined_call_operand.vmem [shape: bf16[10,384], index: 4, kind: output, shape index: {}]  }
   0x1   :  { %v18_v0 = vld [vmem:[%s343_s0] sm:$0xf]  ;;  %v19_v1 = vld [vmem:[%s343_s0 + $0x4] sm:$0x1]  ;;  %v257_v16 = vld [vmem:[%s344_s3 + $0x1c] ss:$12 sps:$4 sm:$0xff]   ;;  %246 = vmatprep.subr.bf16.mxu1 %v269_v17  ;;  %145 = vmatprep.mubr.bf16.mxu0 %v270_v18 }
   0x2   :  { %v20_v2 = vunpack.c.l.bf16 %v18_v0  ;;  %v21_v3 = vunpack.c.l.bf16 %v19_v1  ;;  %v259_v19 = vld [vmem:[%s344_s3 + $0x18] ss:$12 sps:$4 sm:$0xff]   ;;  %vm271_vm2 = vmmov 0   ;;  %125 = vmatprep.subr.bf16.mxu0 %v257_v16  ;;  %v260_v20 = vld [vmem:[%s344_s3 + $0x20] ss:$12 sps:$4 sm:$0xff]  }
   0x3   :  { %250 = vmatprep.mubr.msk.bf16.mxu1 %vm271_vm2, %v269_v17  ;;  %126 = vmatpush1.bf16.msra.mxu0 %v259_v19  ;;  %v261_v21 = vld [vmem:[%s344_s3 + $0x4] ss:$12 sps:$4 sm:$0xff]   ;;  %v263_v22 = vld [vmem:[%s344_s3] ss:$12 sps:$4 sm:$0xff]   ;;  %v264_v23 = vld [vmem:[%s344_s3 + $0x8] ss:$12 sps:$4 sm:$0xff]  }
   0x4   :  { %v23_v4 = vsel %vm22_vm0, %v20_v2, 0.0  ;;  %v27_v5 = vsel %vm26_vm1, %v21_v3, 0.0  ;;  %247 = vmatpush3.bf16.msra.mxu1 %v260_v20  ;;  %127 = vmatprep.subr.bf16.mxu0 %v261_v21  ;;  %v225_v32 = vld [vmem:[%s345_s1] ss:$0 sm:$0xff] }
   0x5   :  { %24 = vadd.xlane.f32.xlu0 %v23_v4  ;;  %248 = vmatprep.subr.bf16.mxu1 %v269_v17  ;;  %v226_v36 = vld [vmem:[%s346_s2] ss:$0 sm:$0xff] }
   0x7   :  { %128 = vmatpush1.bf16.msra.mxu0 %v263_v22 }
   0x8   :  { %249 = vmatpush3.bf16.msra.mxu1 %v264_v23 }
   0x9   :  { %28 = vadd.xlane.f32.xlu0 %v27_v5 }
  0x8e   :  { %v25_v6 = vpop.xlane.xlu0 %24 }
  0x8f   :  { %v31_v7 = vmul.f32 0.03125, %v25_v6 }
  0x91   :  { %v33_v8 = vsub.f32 %v20_v2, %v31_v7 }
  0x92   :  { %v29_v9 = vpop.xlane.xlu0 %28 }
  0x93   :  { %v32_v10 = vmul.f32 0.03125, %v29_v9  ;;  %v35_v11 = vmul.f32 %v33_v8, %v33_v8 }
  0x95   :  { %v34_v12 = vsub.f32 %v21_v3, %v32_v10  ;;  %v37_v13 = vsel %vm22_vm0, %v35_v11, 0.0 }
  0x96   :  { %38 = vadd.xlane.f32.xlu1 %v37_v13 }
  0x97   :  { %v36_v14 = vmul.f32 %v34_v12, %v34_v12 }
  0x99   :  { %v40_v15 = vsel %vm26_vm1, %v36_v14, 0.0 }
  0x9a   :  { %41 = vadd.xlane.f32.xlu1 %v40_v15 }
 0x11f   :  { %v39_v24 = vpop.xlane.xlu1 %38 }
 0x120   :  { %v43_v25 = vmul.f32 0.03125, %v39_v24 }
 0x122   :  { %v45_v26 = vadd.f32 1e-05, %v43_v25 }
 0x123   :  { %v42_v27 = vpop.xlane.xlu1 %41 }
 0x124   :  { %265 = vrsqrt.f32 %v45_v26  ;;  %v44_v28 = vmul.f32 0.03125, %v42_v27 }
 0x126   :  { %v46_v29 = vadd.f32 1e-05, %v44_v28 }
 0x128   :  { %267 = vrsqrt.f32 %v46_v29 }
 0x131   :  { %v266_v30 = vpop.eup %265 }
 0x132   :  { %v49_v31 = vmul.f32 %v266_v30, %v33_v8 }
 0x134   :  { %v58_v35 = vmul.f32 %v225_v32, %v49_v31 }
 0x135   :  { %v268_v33 = vpop.eup %267 }
 0x136   :  { %v50_v34 = vmul.f32 %v268_v33, %v34_v12  ;;  %v67_v38 = vadd.f32 %v226_v36, %v58_v35 }
 0x138   :  { %v59_v37 = vmul.f32 %v225_v32, %v50_v34 }
 0x13a   :  { %v68_v39 = vadd.f32 %v226_v36, %v59_v37 }
 0x13c   :  { %v69_v40 = vpack.c.bf16 %v68_v39, %v67_v38 }
 0x13e   :  { %233 = vmatmul.mubr.msk.bf16.vlgmr.msra.gmra.mxu0 %vm22_vm0, %v69_v40  ;;  %251 = vmatmul.mubr.msk.bf16.vlgmr.msra.gmra.mxu1 %vm22_vm0, %v69_v40 }
 0x1fe   :  { %v147_v41 = vpop.f32.mrf.mxu0  ;;  %v190_v42 = vpop.f32.mrf.mxu1 }
 0x1ff   :  { %v240_v43 = vpack.c.bf16 %v190_v42, %v190_v42 }
 0x200   :  { %v149_v44 = vpop.f32.mrf.mxu0  ;;  %v252_v45 = vpop.f32.mrf.mxu1 }
 0x201   :  { %218 = vst [vmem:[%s347_s4 + $0x8] sm:$0xf] %v240_v43  ;;  %v239_v46 = vpack.c.bf16 %v149_v44, %v147_v41 }
 0x202   :  { %v151_v47 = vpop.f32.mrf.mxu0  ;;  %v193_v48 = vpop.f32.mrf.mxu1 }
 0x203   :  { %217 = vst [vmem:[%s347_s4] sm:$0xff] %v239_v46  ;;  %v242_v49 = vpack.c.bf16 %v193_v48, %v193_v48 }
 0x204   :  { %v153_v50 = vpop.f32.mrf.mxu0  ;;  %v253_v51 = vpop.f32.mrf.mxu1 }
 0x205   :  { %220 = vst [vmem:[%s347_s4 + $0x14] sm:$0x1] %v242_v49  ;;  %v241_v52 = vpack.c.bf16 %v153_v50, %v151_v47 }
 0x207   :  { %219 = vst [vmem:[%s347_s4 + $0xc] sm:$0x11] %v241_v52 }

// kernel: fast_transformer_forward.15
= control target key start
LH: loop header
LB: loop body
LE: loop exit
PB: predicated region body
PF: predicated region fallthrough
CT: control target
= control target key end

     0   :  { %v214_v0 = vmov 0.0   ;;  %vm215_vm0 = vmmov 0   ;;  %vm152_vm1 = vcmask 257024   ;;  %vm154_vm2 = vcmask 253952   ;;  %s283_s1 = inlined_call_operand.vmem [shape: bf16[128,32], index: 1, kind: input, shape index: {}]   ;;  %s284_s0 = inlined_call_operand.vmem [shape: bf16[10,128], index: 0, kind: input, shape index: {}]   ;;  %s285_s3 = inlined_call_operand.vmem [shape: bf16[10,32], index: 3, kind: input, shape index: {}]   ;;  %s286_s2 = inlined_call_operand.vmem [shape: f32[1,32], index: 2, kind: input, shape index: {}]   ;;  %s287_s4 = inlined_call_operand.vmem [shape: bf16[10,32], index: 4, kind: output, shape index: {}]  }
   0x1   :  { %183 = vmatprep.subr.bf16.mxu0 %v214_v0  ;;  %v205_v1 = vld [vmem:[%s283_s1 + $0x38] sm:$0xff]   ;;  %199 = vmatprep.mubr.msk.bf16.mxu0 %vm215_vm0, %v214_v0  ;;  %v206_v2 = vld [vmem:[%s283_s1 + $0x30] sm:$0xff]   ;;  %v207_v3 = vld [vmem:[%s283_s1 + $0x28] sm:$0xff]  }
   0x2   :  { %184 = vmatpush3.bf16.msra.mxu0 %v205_v1  ;;  %v208_v4 = vld [vmem:[%s283_s1 + $0x20] sm:$0xff]   ;;  %v209_v5 = vld [vmem:[%s283_s1 + $0x18] sm:$0xff]   ;;  %v210_v6 = vld [vmem:[%s283_s1 + $0x10] sm:$0xff]  }
   0x3   :  { %185 = vmatprep.subr.bf16.mxu0 %v214_v0  ;;  %v211_v7 = vld [vmem:[%s283_s1 + $0x8] sm:$0xff]   ;;  %v212_v8 = vld [vmem:[%s283_s1] sm:$0xff]  }
   0x4   :  { %v213_v9 = vld [vmem:[%s284_s0] sm:$0x1f]  }
   0x5   :  { %v138_v10 = vld [vmem:[%s285_s3] sm:$0xf]  ;;  %v139_v14 = vld [vmem:[%s285_s3 + $0x4] sm:$0x1] }
   0x6   :  { %186 = vmatpush3.bf16.msra.mxu0 %v206_v2  ;;  %v160_v11 = vld [vmem:[%s286_s2] ss:$0 sm:$0xff]  ;;  %v140_v12 = vunpack.c.l.bf16 %v138_v10  ;;  %v141_v18 = vunpack.c.l.bf16 %v139_v14 }
   0x7   :  { %187 = vmatprep.subr.bf16.mxu0 %v214_v0 }
   0xa   :  { %188 = vmatpush3.bf16.msra.mxu0 %v207_v3 }
   0xb   :  { %189 = vmatprep.subr.bf16.mxu0 %v214_v0 }
   0xe   :  { %190 = vmatpush3.bf16.msra.mxu0 %v208_v4 }
   0xf   :  { %191 = vmatprep.subr.bf16.mxu0 %v214_v0 }
  0x12   :  { %192 = vmatpush3.bf16.msra.mxu0 %v209_v5 }
  0x13   :  { %193 = vmatprep.subr.bf16.mxu0 %v214_v0 }
  0x16   :  { %194 = vmatpush3.bf16.msra.mxu0 %v210_v6 }
  0x17   :  { %195 = vmatprep.subr.bf16.mxu0 %v214_v0 }
  0x1a   :  { %196 = vmatpush3.bf16.msra.mxu0 %v211_v7 }
  0x1b   :  { %197 = vmatprep.subr.bf16.mxu0 %v214_v0 }
  0x1e   :  { %198 = vmatpush3.bf16.msra.mxu0 %v212_v8 }
  0x21   :  { %200 = vmatmul.mubr.bf16.vlgmr.msra.gmra.mxu0 %v213_v9 }
  0xe1   :  { %v131_v13 = vpop.f32.mrf.mxu0 }
  0xe2   :  { %v132_v15 = vadd.f32 %v160_v11, %v131_v13 }
  0xe3   :  { %v201_v16 = vpop.f32.mrf.mxu0 }
  0xe4   :  { %v142_v17 = vadd.f32 %v140_v12, %v132_v15 }
  0xe5   :  { %v134_v19 = vpop.f32.mrf.mxu0 }
  0xe6   :  { %v172_v20 = vpack.c.bf16 %v142_v17, %v142_v17  ;;  %v135_v21 = vadd.f32 %v160_v11, %v134_v19 }
  0xe7   :  { %v202_v22 = vpop.f32.mrf.mxu0 }
  0xe8   :  { %153 = vst.msk [vmem:[%s287_s4] sm:$0xf] %vm152_vm1, %v172_v20  ;;  %v143_v23 = vadd.f32 %v141_v18, %v135_v21 }
  0xea   :  { %v173_v24 = vpack.c.bf16 %v143_v23, %v143_v23 }
  0xec   :  { %155 = vst.msk [vmem:[%s287_s4 + $0x4] sm:$0x1] %vm154_vm2, %v173_v24 }

// kernel: fast_transformer_forward.14
= control target key start
LH: loop header
LB: loop body
LE: loop exit
PB: predicated region body
PF: predicated region fallthrough
CT: control target
= control target key end

     0   :  { %s1687_s17 = smov 0   ;;  %s1689_s18 = smov 0   ;;  %s1904_s0 = inlined_call_operand.vmem [shape: bf16[2,5,384], index: 0, kind: input, shape index: {}, may-alias: {0,1,2}]   ;;  %s1905_s1 = inlined_call_operand.vmem [shape: bf16[2,5,384], index: 1, kind: input, shape index: {}, may-alias: {0,1,2}]   ;;  %s1906_s2 = inlined_call_operand.vmem [shape: bf16[2,5,384], index: 2, kind: input, shape index: {}, may-alias: {0,1,2}]   ;;  %s1907_s3 = inlined_call_operand.vmem [shape: f32[5,128], index: 3, kind: input, shape index: {}]   ;;  %s1908_s4 = inlined_call_operand.vmem [shape: f32[5,128], index: 4, kind: input, shape index: {}]   ;;  %s1909_s5 = inlined_call_operand.vmem [shape: f32[5,128], index: 5, kind: input, shape index: {}]   ;;  %s1910_s6 = inlined_call_operand.vmem [shape: bf16[1,128,4], index: 6, kind: input, shape index: {}]   ;;  %s1911_s7 = inlined_call_operand.vmem [shape: bf16[1,128,4], index: 7, kind: input, shape index: {}]   ;;  %s1912_s8 = inlined_call_operand.vmem [shape: bf16[1,4,128], index: 8, kind: input, shape index: {}]   ;;  %s1913_s9 = inlined_call_operand.vmem [shape: bf16[1,128,128], index: 9, kind: input, shape index: {}]   ;;  %s1914_s10 = inlined_call_operand.vmem [shape: f32[1,128], index: 10, kind: input, shape index: {}]   ;;  %s1915_s11 = inlined_call_operand.vmem [shape: bf16[2,5,128], index: 11, kind: output, shape index: {}]  }
   0x1   :  { %s1691_s19 = smov 0  }
   0x2 LB: > { %s33_s20 = sadd.s32 1, %s1617_s18  ;;  %p1395_p0 = scmp.ge.s32.totalorder %s1621_s19, 1  ;;  %s1621_s19 = sphi %s1691_s19, %s21_s19   ;;  %s1617_s18 = sphi %s1689_s18, %s1917_s18   ;;  %s1613_s17 = sphi %s1687_s17, %s1916_s17  }
   0x3   : > { %p35_p1 = scmp.ge.s32.totalorder %s33_s20, 2  ;;  %p468_p2 = scmp.lt.s32.totalorder %s1621_s19, 3 }
   0x5   : > { %s1919_s20 = smov (%p35_p1, %s33_s20), 0  ;;  %p469_p3 = pnand %p1395_p0, %p468_p2 }
   0x6   : > { %p565_p4 = scmp.lt.s32.totalorder (!%p469_p3), %s1613_s17, 1  ;;  %s1625_s15 = smov (!%p469_p3), 127  }
   0x7   : > { %472 = sbr.rel (%p469_p3) target bundleno = 1180 (0x49c), region = 64  ;;  %s1626_s23 = smov (!%p469_p3), 1  }
   0xc   : > { %v1567_v0 = vld [vmem:[%s1910_s6 + $0x38] sm:$0xff]   ;;  %v1623_v1 = vmov 0.0   ;;  %v1568_v2 = vld [vmem:[%s1910_s6 + $0x30] sm:$0xff]   ;;  %vm1624_vm0 = vmmov 0   ;;  %s1921_s17 = smov (!%p565_p4, %s1613_s17), 1  ;;  %v1569_v3 = vld [vmem:[%s1910_s6 + $0x28] sm:$0xff]  }
   0xd   : > { %1464 = vmatprep.subr.bf16.mxu0 %v1623_v1  ;;  %1490 = vmatprep.subr.bf16.mxu1 %v1623_v1  ;;  %v1570_v4 = vld [vmem:[%s1910_s6 + $0x20] sm:$0xff]   ;;  %v1571_v5 = vld [vmem:[%s1910_s6 + $0x18] sm:$0xff]   ;;  %v1572_v6 = vld [vmem:[%s1910_s6 + $0x10] sm:$0xff]   ;;  %s1741_s16 = smul.u32 12, %s1921_s17  ;;  %vm817_vm1 = vcmask 1041408   ;;  %vm792_vm2 = vcmask 28672  }
   0xe   : > { %1465 = vmatpush3.bf16.msra.mxu0 %v1567_v0  ;;  %1480 = vmatprep.mubr.msk.bf16.mxu0 %vm1624_vm0, %v1623_v1  ;;  %v1573_v7 = vld [vmem:[%s1910_s6 + $0x8] sm:$0xff]   ;;  %v1574_v8 = vld [vmem:[%s1910_s6] sm:$0xff]   ;;  %v1575_v15 = vld [vmem:[%s1911_s7 + $0x38] sm:$0xff]   ;;  %vm813_vm3 = vcmask 31744   ;;  %vm862_vm4 = vcmask 1044480   ;;  %vm1146_vm5 = vcmask 1042432  }
   0xf   : > { %1466 = vmatprep.subr.bf16.mxu0 %v1623_v1  ;;  %1506 = vmatprep.mubr.msk.bf16.mxu1 %vm1624_vm0, %v1623_v1  ;;  %s572_s25 = scalar_lea.vmem %s1904_s0, %s1741_s16  ;;  %v703_v10 = vld [vmem:[%s1912_s8] sm:$0x3]  ;;  %s1430_s28 = sadd.s32 4, %s1741_s16  ;;  %v1576_v16 = vld [vmem:[%s1911_s7 + $0x30] sm:$0xff]   ;;  %v1577_v17 = vld [vmem:[%s1911_s7 + $0x28] sm:$0xff]  }
  0x10   : > { %v635_v9 = vld [vmem:[%s572_s25] sm:$0x7]  ;;  %v819_v11 = vsel %vm817_vm1, %v703_v10, 0  ;;  %s581_s12 = scalar_lea.vmem %s1905_s1, %s1430_s28  ;;  %1491 = vmatpush3.bf16.msra.mxu1 %v1575_v15  ;;  %v1579_v43 = vld [vmem:[%s1911_s7 + $0x18] sm:$0xff]   ;;  %v1580_v44 = vld [vmem:[%s1911_s7 + $0x10] sm:$0xff]   ;;  %s1432_s30 = sadd.s32 8, %s1741_s16 }
  0x11   : > { %v636_v12 = vld [vmem:[%s581_s12] sm:$0x7]  ;;  %v1762_v13 = vunpack.c.l.bf16 %v635_v9  ;;  %1492 = vmatprep.subr.bf16.mxu1 %v1623_v1  ;;  %v1581_v45 = vld [vmem:[%s1911_s7 + $0x8] sm:$0xff]   ;;  %s591_s22 = scalar_lea.vmem %s1906_s2, %s1432_s30  ;;  %v1584_v10 = vld [vmem:[%s1913_s9 + $0x30] sm:$0xff]   ;;  %vm1147_vm6 = vsmask.f32 2304 }
  0x12   : > { %1467 = vmatpush3.bf16.msra.mxu0 %v1568_v2  ;;  %v1764_v14 = vunpack.c.l.bf16 %v636_v12  ;;  %v1578_v42 = vld [vmem:[%s1911_s7 + $0x20] sm:$0xff]   ;;  %v1585_v12 = vld [vmem:[%s1913_s9 + $0x28] sm:$0xff]   ;;  %vm1148_vm7 = vmand %vm1146_vm5, %vm1147_vm6 }
  0x13   : > { %1468 = vmatprep.subr.bf16.mxu0 %v1623_v1  ;;  %644 = vrot.lane.b32.xlu0 %v1762_v13, %s1625_s15  ;;  %v1582_v46 = vld [vmem:[%s1911_s7] sm:$0xff]  }
  0x14   : > { %653 = vrot.lane.b32.xlu1 %v1764_v14, %s1625_s15  ;;  %1493 = vmatpush3.bf16.msra.mxu1 %v1576_v16  ;;  %v1814_v48 = vld [vmem:[%s1907_s3] sm:$0x1f] }
  0x15   : > { %1494 = vmatprep.subr.bf16.mxu1 %v1623_v1  ;;  %v1819_v49 = vld [vmem:[%s1908_s4] sm:$0x1f]  ;;  %v648_v50 = vmul.f32 %v1814_v48, %v1762_v13 }
  0x16   : > { %1469 = vmatpush3.bf16.msra.mxu0 %v1569_v3  ;;  %v1827_v52 = vld [vmem:[%s1909_s5] sm:$0x1f] }
  0x17   : > { %1470 = vmatprep.subr.bf16.mxu0 %v1623_v1  ;;  %646 = vrot.lane.b32.xlu0 %v1762_v13, %s1626_s23 }
  0x18   : > { %655 = vrot.lane.b32.xlu1 %v1764_v14, %s1626_s23  ;;  %1495 = vmatpush3.bf16.msra.mxu1 %v1577_v17 }
  0x19   : > { %1496 = vmatprep.subr.bf16.mxu1 %v1623_v1 }
  0x1a   : > { %1471 = vmatpush3.bf16.msra.mxu0 %v1570_v4 }
  0x1b   : > { %1472 = vmatprep.subr.bf16.mxu0 %v1623_v1 }
  0x1c   : > { %1497 = vmatpush3.bf16.msra.mxu1 %v1578_v42  ;;  %v1589_v42 = vld [vmem:[%s1913_s9 + $0x8] sm:$0xff]  }
  0x1d   : > { %1498 = vmatprep.subr.bf16.mxu1 %v1623_v1 }
  0x1e   : > { %1473 = vmatpush3.bf16.msra.mxu0 %v1571_v5 }
  0x1f   : > { %1474 = vmatprep.subr.bf16.mxu0 %v1623_v1 }
  0x20   : > { %1499 = vmatpush3.bf16.msra.mxu1 %v1579_v43  ;;  %v1590_v43 = vld [vmem:[%s1913_s9] sm:$0xff]  }
  0x21   : > { %1500 = vmatprep.subr.bf16.mxu1 %v1623_v1 }
  0x22   : > { %1475 = vmatpush3.bf16.msra.mxu0 %v1572_v6 }
  0x23   : > { %1476 = vmatprep.subr.bf16.mxu0 %v1623_v1 }
  0x24   : > { %1501 = vmatpush3.bf16.msra.mxu1 %v1580_v44 }
  0x25   : > { %1502 = vmatprep.subr.bf16.mxu1 %v1623_v1 }
  0x26   : > { %1477 = vmatpush3.bf16.msra.mxu0 %v1573_v7 }
  0x27   : > { %1478 = vmatprep.subr.bf16.mxu0 %v1623_v1 }
  0x28   : > { %1503 = vmatpush3.bf16.msra.mxu1 %v1581_v45  ;;  %v657_v45 = vmul.f32 %v1814_v48, %v1764_v14 }
  0x29   : > { %1504 = vmatprep.subr.bf16.mxu1 %v1623_v1 }
  0x2a   : > { %1479 = vmatpush3.bf16.msra.mxu0 %v1574_v8  ;;  %v1583_v8 = vld [vmem:[%s1913_s9 + $0x38] sm:$0xff]  }
  0x2b   : > { %1484 = vmatprep.subr.bf16.mxu0 %v1623_v1 }
  0x2c   : > { %1505 = vmatpush3.bf16.msra.mxu1 %v1582_v46 }
  0x2d   : > { %1481 = vmatmul.mubr.bf16.vlgmr.msra.gmra.mxu0 %v635_v9  ;;  %1516 = vmatprep.subr.bf16.mxu1 %v1623_v1  ;;  %v637_v9 = vld [vmem:[%s591_s22] sm:$0x7]  ;;  %s1399_s22 = sshll.u32 %s1921_s17, 2 }
  0x2e   : > { %1486 = vmatprep.mubr.msk.bf16.mxu0 %vm1624_vm0, %v1623_v1  ;;  %1485 = vmatpush3.bf16.msra.mxu0 %v819_v11 }
  0x2f   : > { %1510 = vmatprep.subr.bf16.mxu0 %v1623_v1 }
  0x85   : > { %v645_v47 = vpop.permute.xlu0 %644 }
  0x86   : > { %v649_v51 = vmul.f32 %v645_v47, %v1819_v49  ;;  %v654_v44 = vpop.permute.xlu1 %653 }
  0x87   : > { %v658_v46 = vmul.f32 %v654_v44, %v1819_v49 }
  0x88   : > { %v650_v54 = vadd.f32 %v649_v51, %v648_v50 }
  0x89   : > { %v647_v53 = vpop.permute.xlu0 %646  ;;  %v659_v50 = vadd.f32 %v658_v46, %v657_v45 }
  0x8a   : > { %v651_v55 = vmul.f32 %v647_v53, %v1827_v52  ;;  %v656_v47 = vpop.permute.xlu1 %655 }
  0x8b   : > { %v660_v51 = vmul.f32 %v656_v47, %v1827_v52 }
  0x8c   : > { %v652_v56 = vadd.f32 %v651_v55, %v650_v54 }
  0x8d   : > { %v661_v53 = vadd.f32 %v660_v51, %v659_v50 }
  0xed   : > { %v786_v18 = vpop.f32.mrf.mxu0 }
  0xee   : > { %v793_v19 = vsel %vm792_vm2, %v786_v18, -inf }
  0xef   : > { %v794_v20 = vrot.slane %v793_v19, 4  ;;  %v1482_v21 = vpop.f32.mrf.mxu0 }
  0xf1   : > { %v795_v22 = vmax.f32 %v793_v19, %v794_v20  ;;  %v789_v23 = vpop.f32.mrf.mxu0 }
  0xf3   : > { %v796_v24 = vrot.slane %v795_v22, 2  ;;  %v1483_v25 = vpop.f32.mrf.mxu0 }
  0xf5   : > { %v797_v26 = vmax.f32 %v795_v22, %v796_v24 }
  0xf7   : > { %v798_v27 = vrot.slane %v797_v26, 1 }
  0xf9   : > { %v799_v28 = vmax.f32 %v797_v26, %v798_v27 }
  0xfb   : > { %v800_v29 = vsub.f32 %v786_v18, %v799_v28 }
  0xfd   : > { %v801_v30 = vmul.f32 1.442695, %v800_v29 }
  0xff   : > { %1591 = vpow2.f32 %v801_v30 }
 0x10c   : > { %v1592_v31 = vpop.eup %1591 }
 0x10d   : > { %v803_v32 = vsel %vm792_vm2, %v1592_v31, 0.0 }
 0x10e   : > { %v804_v33 = vrot.slane %v803_v32, 4 }
 0x110   : > { %v805_v34 = vadd.f32 %v804_v33, %v803_v32 }
 0x112   : > { %v806_v35 = vrot.slane %v805_v34, 2 }
 0x114   : > { %v807_v36 = vadd.f32 %v806_v35, %v805_v34 }
 0x116   : > { %v808_v37 = vrot.slane %v807_v36, 1 }
 0x118   : > { %v809_v38 = vadd.f32 %v808_v37, %v807_v36 }
 0x11a   : > { %1593 = vrcp.f32 %v809_v38 }
 0x127   : > { %v1594_v39 = vpop.eup %1593 }
 0x128   : > { %v811_v40 = vmul.f32 %v1594_v39, %v1592_v31  ;;  %v1586_v39 = vld [vmem:[%s1913_s9 + $0x20] sm:$0xff]  }
 0x12a   : > { %v812_v41 = vpack.c.bf16 %v811_v40, %v811_v40  ;;  %v1587_v40 = vld [vmem:[%s1913_s9 + $0x18] sm:$0xff]  }
 0x12c   : > { %1487 = vmatmul.mubr.msk.bf16.vlgmr.msra.gmra.mxu0 %vm813_vm3, %v812_v41  ;;  %v1588_v41 = vld [vmem:[%s1913_s9 + $0x10] sm:$0xff]  }
 0x12d   : > { %1511 = vmatpush3.bf16.msra.mxu0 %v819_v11  ;;  %1512 = vmatprep.mubr.msk.bf16.mxu0 %vm1624_vm0, %v1623_v1  ;;  %v1844_v11 = vunpack.c.l.bf16 %v637_v9 }
 0x12f   : > { %662 = vrot.lane.b32.xlu0 %v1844_v11, %s1625_s15  ;;  %664 = vrot.lane.b32.xlu1 %v1844_v11, %s1626_s23  ;;  %s633_s15 = scalar_lea.vmem %s1915_s11, %s1399_s22 }
 0x1ec   : > { %v855_v57 = vpop.f32.mrf.mxu0 }
 0x1ed   : > { %v861_v58 = vmul.f32 %v855_v57, %v652_v56  ;;  %v663_v56 = vpop.permute.xlu0 %662 }
 0x1ee   : > { %v1488_v59 = vpop.f32.mrf.mxu0 }
 0x1ef   : > { %v863_v60 = vsel %vm862_vm4, %v861_v58, 0.0 }
 0x1f0   : > { %v864_v61 = vrot.slane %v863_v60, 4  ;;  %v858_v62 = vpop.f32.mrf.mxu0 }
 0x1f2   : > { %v865_v63 = vadd.f32 %v864_v61, %v863_v60  ;;  %v1489_v0 = vpop.f32.mrf.mxu0  ;;  %v666_v60 = vmul.f32 %v1814_v48, %v1844_v11  ;;  %v665_v61 = vpop.permute.xlu1 %664  ;;  %v1418_v48 = vld [vmem:[%s1914_s10] ss:$0 sm:$0xff] }
 0x1f4   : > { %v866_v2 = vrot.slane %v865_v63, 2 }
 0x1f6   : > { %v867_v3 = vadd.f32 %v866_v2, %v865_v63 }
 0x1f8   : > { %v868_v4 = vrot.slane %v867_v3, 1 }
 0x1fa   : > { %v869_v5 = vadd.f32 %v868_v4, %v867_v3  ;;  %v669_v3 = vmul.f32 %v665_v61, %v1827_v52 }
 0x1fc   : > { %v870_v6 = vmul.f32 %v869_v5, %v1764_v14  ;;  %v667_v14 = vmul.f32 %v663_v56, %v1819_v49 }
 0x1fe   : > { %v871_v7 = vpack.c.bf16 %v870_v6, %v870_v6  ;;  %v668_v2 = vadd.f32 %v667_v14, %v666_v60 }
 0x200   : > { %1507 = vmatmul.mubr.bf16.vlgmr.msra.gmra.mxu1 %v871_v7  ;;  %v670_v6 = vadd.f32 %v669_v3, %v668_v2 }
 0x201   : > { %1532 = vmatprep.mubr.msk.bf16.mxu1 %vm1624_vm0, %v1623_v1  ;;  %1517 = vmatpush3.bf16.msra.mxu1 %v1583_v8 }
 0x202   : > { %1518 = vmatprep.subr.bf16.mxu1 %v1623_v1 }
 0x205   : > { %1519 = vmatpush3.bf16.msra.mxu1 %v1584_v10 }
 0x206   : > { %1520 = vmatprep.subr.bf16.mxu1 %v1623_v1 }
 0x209   : > { %1521 = vmatpush3.bf16.msra.mxu1 %v1585_v12  ;;  %v1149_v12 = vld [vmem:[%s633_s15] sm:$0x7] }
 0x20a   : > { %1522 = vmatprep.subr.bf16.mxu1 %v1623_v1 }
 0x20d   : > { %1523 = vmatpush3.bf16.msra.mxu1 %v1586_v39 }
 0x20e   : > { %1524 = vmatprep.subr.bf16.mxu1 %v1623_v1 }
 0x211   : > { %1525 = vmatpush3.bf16.msra.mxu1 %v1587_v40 }
 0x212   : > { %1526 = vmatprep.subr.bf16.mxu1 %v1623_v1 }
 0x215   : > { %1527 = vmatpush3.bf16.msra.mxu1 %v1588_v41 }
 0x216   : > { %1528 = vmatprep.subr.bf16.mxu1 %v1623_v1 }
 0x219   : > { %1529 = vmatpush3.bf16.msra.mxu1 %v1589_v42 }
 0x21a   : > { %1530 = vmatprep.subr.bf16.mxu1 %v1623_v1 }
 0x21d   : > { %1531 = vmatpush3.bf16.msra.mxu1 %v1590_v43 }
 0x2c0   : > { %v954_v15 = vpop.f32.mrf.mxu1 }
 0x2c1   : > { %v960_v16 = vsel %vm792_vm2, %v954_v15, -inf }
 0x2c2   : > { %v961_v17 = vrot.slane %v960_v16, 4  ;;  %v1508_v18 = vpop.f32.mrf.mxu1 }
 0x2c4   : > { %v962_v19 = vmax.f32 %v960_v16, %v961_v17  ;;  %v957_v20 = vpop.f32.mrf.mxu1 }
 0x2c6   : > { %v963_v21 = vrot.slane %v962_v19, 2  ;;  %v1509_v22 = vpop.f32.mrf.mxu1 }
 0x2c8   : > { %v964_v23 = vmax.f32 %v962_v19, %v963_v21 }
 0x2ca   : > { %v965_v24 = vrot.slane %v964_v23, 1 }
 0x2cc   : > { %v966_v25 = vmax.f32 %v964_v23, %v965_v24 }
 0x2ce   : > { %v967_v26 = vsub.f32 %v954_v15, %v966_v25 }
 0x2d0   : > { %v968_v27 = vmul.f32 1.442695, %v967_v26 }
 0x2d2   : > { %1595 = vpow2.f32 %v968_v27 }
 0x2df   : > { %v1596_v28 = vpop.eup %1595 }
 0x2e0   : > { %v970_v29 = vsel %vm792_vm2, %v1596_v28, 0.0 }
 0x2e1   : > { %v971_v30 = vrot.slane %v970_v29, 4 }
 0x2e3   : > { %v972_v31 = vadd.f32 %v971_v30, %v970_v29 }
 0x2e5   : > { %v973_v32 = vrot.slane %v972_v31, 2 }
 0x2e7   : > { %v974_v33 = vadd.f32 %v973_v32, %v972_v31 }
 0x2e9   : > { %v975_v34 = vrot.slane %v974_v33, 1 }
 0x2eb   : > { %v976_v35 = vadd.f32 %v975_v34, %v974_v33 }
 0x2ed   : > { %1597 = vrcp.f32 %v976_v35 }
 0x2fa   : > { %v1598_v36 = vpop.eup %1597 }
 0x2fb   : > { %v978_v37 = vmul.f32 %v1598_v36, %v1596_v28 }
 0x2fd   : > { %v979_v38 = vpack.c.bf16 %v978_v37, %v978_v37 }
 0x2ff   : > { %1513 = vmatmul.mubr.msk.bf16.vlgmr.msra.gmra.mxu0 %vm813_vm3, %v979_v38 }
 0x3bf   : > { %v1017_v54 = vpop.f32.mrf.mxu0 }
 0x3c0   : > { %v1023_v55 = vmul.f32 %v1017_v54, %v661_v53 }
 0x3c1   : > { %v1514_v1 = vpop.f32.mrf.mxu0 }
 0x3c2   : > { %v1024_v57 = vsel %vm862_vm4, %v1023_v55, 0.0 }
 0x3c3   : > { %v1025_v58 = vrot.slane %v1024_v57, 4  ;;  %v1020_v59 = vpop.f32.mrf.mxu0 }
 0x3c5   : > { %v1026_v62 = vadd.f32 %v1025_v58, %v1024_v57  ;;  %v1515_v63 = vpop.f32.mrf.mxu0 }
 0x3c7   : > { %v1027_v0 = vrot.slane %v1026_v62, 2 }
 0x3c9   : > { %v1028_v4 = vadd.f32 %v1027_v0, %v1026_v62 }
 0x3cb   : > { %v1029_v5 = vrot.slane %v1028_v4, 1 }
 0x3cd   : > { %v1030_v7 = vadd.f32 %v1029_v5, %v1028_v4 }
 0x3cf   : > { %v1031_v8 = vmul.f32 %v1030_v7, %v670_v6 }
 0x3d1   : > { %v1032_v9 = vpack.c.bf16 %v1031_v8, %v1031_v8 }
 0x3d3   : > { %1533 = vmatmul.mubr.bf16.vlgmr.msra.gmra.mxu1 %v1032_v9 }
 0x493   : > { %v1138_v49 = vpop.f32.mrf.mxu1 }
 0x494   : > { %v1139_v10 = vadd.f32 %v1418_v48, %v1138_v49 }
 0x495   : > { %v1534_v52 = vpop.f32.mrf.mxu1 }
 0x496   : > { %v1144_v11 = vadd.f32 %v1139_v10, %v1762_v13 }
 0x497   : > { %v1141_v15 = vpop.f32.mrf.mxu1 }
 0x498   : > { %v1145_v16 = vpack.c.bf16 %v1144_v11, %v1144_v11 }
 0x499   : > { %v1535_v17 = vpop.f32.mrf.mxu1 }
 0x49a   : > { %v1150_v18 = vsel %vm1148_vm7, %v1145_v16, %v1149_v12 }
 0x49b   : > { %1151 = vst [vmem:[%s633_s15] sm:$0x7] %v1150_v18 }
 0x49c PF: > { %s21_s19 = sadd.s32 1, %s1621_s19   ;;  %s1916_s17 = smov %s1617_s18 }
 0x49d   : > { %p18_p5 = scmp.ge.s32.totalorder %s21_s19, 4   ;;  %s1917_s18 = smov %s1919_s20 }
 0x49f   :  { %20 = sbr.rel (!%p18_p5) target bundleno = 2 (0x2), region = 124 }

// kernel: fast_transformer_forward.16
= control target key start
LH: loop header
LB: loop body
LE: loop exit
PB: predicated region body
PF: predicated region fallthrough
CT: control target
= control target key end

     0   :  { %vm25_vm0 = vcmask 261120   ;;  %vm29_vm1 = vcmask 254976   ;;  %v197_v16 = vmov 0.0   ;;  %vm198_vm2 = vmmov 0   ;;  %s259_s0 = inlined_call_operand.vmem [shape: bf16[10,32], index: 0, kind: input, shape index: {}]   ;;  %s260_s3 = inlined_call_operand.vmem [shape: bf16[32,128], index: 3, kind: input, shape index: {}]   ;;  %s261_s1 = inlined_call_operand.vmem [shape: f32[1,32], index: 1, kind: input, shape index: {}]   ;;  %s262_s2 = inlined_call_operand.vmem [shape: f32[1,32], index: 2, kind: input, shape index: {}]   ;;  %s263_s4 = inlined_call_operand.vmem [shape: f32[1,128], index: 4, kind: input, shape index: {}]   ;;  %s264_s5 = inlined_call_operand.vmem [shape: bf16[10,128], index: 5, kind: output, shape index: {}]  }
   0x1   :  { %v21_v0 = vld [vmem:[%s259_s0] sm:$0xf]  ;;  %v22_v1 = vld [vmem:[%s259_s0 + $0x4] sm:$0x1]  ;;  %177 = vmatprep.subr.bf16.mxu0 %v197_v16  ;;  %v187_v17 = vld [vmem:[%s260_s3 + $0x8] sm:$0xff]   ;;  %181 = vmatprep.mubr.msk.bf16.mxu0 %vm198_vm2, %v197_v16 }
   0x2   :  { %v23_v2 = vunpack.c.l.bf16 %v21_v0  ;;  %v24_v3 = vunpack.c.l.bf16 %v22_v1  ;;  %178 = vmatpush3.bf16.msra.mxu0 %v187_v17  ;;  %v188_v18 = vld [vmem:[%s260_s3] sm:$0xff]  }
   0x3   :  { %179 = vmatprep.subr.bf16.mxu0 %v197_v16  ;;  %v164_v27 = vld [vmem:[%s261_s1] ss:$0 sm:$0xff] }
   0x4   :  { %v26_v4 = vsel %vm25_vm0, %v23_v2, 0.0  ;;  %v30_v5 = vsel %vm29_vm1, %v24_v3, 0.0  ;;  %v165_v31 = vld [vmem:[%s262_s2] ss:$0 sm:$0xff] }
   0x5   :  { %27 = vadd.xlane.f32.xlu0 %v26_v4  ;;  %v166_v36 = vld [vmem:[%s263_s4] ss:$0 sm:$0xff] }
   0x6   :  { %180 = vmatpush3.bf16.msra.mxu0 %v188_v18 }
   0x9   :  { %31 = vadd.xlane.f32.xlu0 %v30_v5 }
  0x8e   :  { %v28_v6 = vpop.xlane.xlu0 %27 }
  0x8f   :  { %v34_v7 = vmul.f32 0.03125, %v28_v6 }
  0x91   :  { %v36_v8 = vsub.f32 %v23_v2, %v34_v7 }
  0x92   :  { %v32_v9 = vpop.xlane.xlu0 %31 }
  0x93   :  { %v35_v10 = vmul.f32 0.03125, %v32_v9  ;;  %v38_v11 = vmul.f32 %v36_v8, %v36_v8 }
  0x95   :  { %v37_v12 = vsub.f32 %v24_v3, %v35_v10  ;;  %v40_v13 = vsel %vm25_vm0, %v38_v11, 0.0 }
  0x96   :  { %41 = vadd.xlane.f32.xlu1 %v40_v13 }
  0x97   :  { %v39_v14 = vmul.f32 %v37_v12, %v37_v12 }
  0x99   :  { %v43_v15 = vsel %vm29_vm1, %v39_v14, 0.0 }
  0x9a   :  { %44 = vadd.xlane.f32.xlu1 %v43_v15 }
 0x11f   :  { %v42_v19 = vpop.xlane.xlu1 %41 }
 0x120   :  { %v46_v20 = vmul.f32 0.03125, %v42_v19 }
 0x122   :  { %v48_v21 = vadd.f32 1e-05, %v46_v20 }
 0x123   :  { %v45_v22 = vpop.xlane.xlu1 %44 }
 0x124   :  { %189 = vrsqrt.f32 %v48_v21  ;;  %v47_v23 = vmul.f32 0.03125, %v45_v22 }
 0x126   :  { %v49_v24 = vadd.f32 1e-05, %v47_v23 }
 0x128   :  { %191 = vrsqrt.f32 %v49_v24 }
 0x131   :  { %v190_v25 = vpop.eup %189 }
 0x132   :  { %v52_v26 = vmul.f32 %v190_v25, %v36_v8 }
 0x134   :  { %v61_v30 = vmul.f32 %v164_v27, %v52_v26 }
 0x135   :  { %v192_v28 = vpop.eup %191 }
 0x136   :  { %v53_v29 = vmul.f32 %v192_v28, %v37_v12  ;;  %v70_v33 = vadd.f32 %v165_v31, %v61_v30 }
 0x138   :  { %v62_v32 = vmul.f32 %v164_v27, %v53_v29 }
 0x13a   :  { %v71_v34 = vadd.f32 %v165_v31, %v62_v32 }
 0x13c   :  { %v72_v35 = vpack.c.bf16 %v71_v34, %v70_v33 }
 0x13e   :  { %182 = vmatmul.mubr.msk.bf16.vlgmr.msra.gmra.mxu0 %vm25_vm0, %v72_v35 }
 0x1fe   :  { %v133_v37 = vpop.f32.mrf.mxu0 }
 0x1ff   :  { %v134_v38 = vadd.f32 %v166_v36, %v133_v37 }
 0x200   :  { %v183_v39 = vpop.f32.mrf.mxu0 }
 0x201   :  { %v142_v40 = vmul.f32 0.70710677, %v134_v38  ;;  %v140_v46 = vmul.f32 0.5, %v134_v38 }
 0x202   :  { %v136_v41 = vpop.f32.mrf.mxu0 }
 0x203   :  { %193 = verf.f32 %v142_v40  ;;  %v137_v42 = vadd.f32 %v166_v36, %v136_v41 }
 0x204   :  { %v184_v43 = vpop.f32.mrf.mxu0 }
 0x205   :  { %v143_v44 = vmul.f32 0.70710677, %v137_v42  ;;  %v141_v51 = vmul.f32 0.5, %v137_v42 }
 0x207   :  { %195 = verf.f32 %v143_v44 }
 0x210   :  { %v194_v45 = vpop.eup %193 }
 0x211   :  { %v146_v47 = vadd.f32 1.0, %v194_v45 }
 0x213   :  { %v148_v48 = vmul.f32 %v146_v47, %v140_v46 }
 0x214   :  { %v196_v49 = vpop.eup %195 }
 0x215   :  { %v172_v50 = vpack.c.bf16 %v148_v48, %v148_v48  ;;  %v147_v52 = vadd.f32 1.0, %v196_v49 }
 0x217   :  { %158 = vst [vmem:[%s264_s5] sm:$0xf] %v172_v50  ;;  %v149_v53 = vmul.f32 %v147_v52, %v141_v51 }
 0x219   :  { %v173_v54 = vpack.c.bf16 %v149_v53, %v149_v53 }
 0x21b   :  { %159 = vst [vmem:[%s264_s5 + $0x4] sm:$0x1] %v173_v54 }

// kernel: fast_transformer_forward.23
= control target key start
LH: loop header
LB: loop body
LE: loop exit
PB: predicated region body
PF: predicated region fallthrough
CT: control target
= control target key end

     0   :  { %vm24_vm0 = vcmask 254976   ;;  %s239_s0 = inlined_call_operand.vmem [shape: bf16[2,32], index: 0, kind: input, shape index: {}]   ;;  %s240_s1 = inlined_call_operand.vmem [shape: f32[1,32], index: 1, kind: input, shape index: {}]   ;;  %s241_s2 = inlined_call_operand.vmem [shape: f32[1,32], index: 2, kind: input, shape index: {}]   ;;  %s242_s3 = inlined_call_operand.vmem [shape: bf16[32,10], index: 3, kind: input, shape index: {}]   ;;  %s243_s4 = inlined_call_operand.vmem [shape: f32[1,10], index: 4, kind: input, shape index: {}]   ;;  %s244_s5 = inlined_call_operand.hbm [shape: f32[2,10], index: 5, kind: output, shape index: {}]  }
   0x1   :  { %v22_v0 = vld [vmem:[%s239_s0] sm:$0x1] }
   0x2   :  { %v23_v1 = vunpack.c.l.bf16 %v22_v0 }
   0x3   :  { %10 = vsyncpa [#allocation3], 0  ;;  %v159_v8 = vld [vmem:[%s242_s3 + $0x8] sm:$0xff]   ;;  %v185_v9 = vmov 0.0   ;;  %vm186_vm1 = vmmov 0   ;;  %v160_v10 = vld [vmem:[%s242_s3] sm:$0xff]  }
   0x4   :  { %v25_v2 = vsel %vm24_vm0, %v23_v1, 0.0  ;;  %148 = vmatprep.subr.bf16.mxu0 %v185_v9  ;;  %152 = vmatprep.mubr.msk.bf16.mxu0 %vm186_vm1, %v185_v9  ;;  %v139_v15 = vld [vmem:[%s240_s1] ss:$0 sm:$0xff]  ;;  %vm79_vm2 = vcmask 261120   ;;  %s187_s28 = smov [#allocation2]   ;;  %vm123_vm3 = vcmask 74752  }
   0x5   :  { %26 = vadd.xlane.f32.xlu0 %v25_v2  ;;  %149 = vmatpush3.bf16.msra.mxu0 %v159_v8  ;;  %v140_v17 = vld [vmem:[%s241_s2] ss:$0 sm:$0xff]  ;;  %s131_s29 = sshll.u32 %s187_s28, 4  ;;  %s132_s29 = int_to_ptr.vmem [resolvable:$true] %s131_s29 }
   0x6   :  { %150 = vmatprep.subr.bf16.mxu0 %v185_v9  ;;  %v141_v21 = vld [vmem:[%s243_s4] ss:$0 sm:$0xff]  ;;  %s163_s1 = scalar_lea.vmem %s132_s29, 32  ;;  %p168_p1 = scmp.lt.s32.totalorder %s132_s29, %s132_s29 }
   0x7   :  { %p164_p0 = scmp.ne.s32.totalorder %s132_s29, %s163_s1  ;;  %p169_p2 = scmp.lt.s32.totalorder %s163_s1, %s163_s1 }
   0x9   :  { %151 = vmatpush3.bf16.msra.mxu0 %v160_v10  ;;  %p170_p3 = por %p169_p2, %p168_p1 }
   0xb   :  { %p171_p4 = pnand %p170_p3, %p164_p0 }
  0x8e   :  { %v27_v3 = vpop.xlane.xlu0 %26 }
  0x8f   :  { %v29_v4 = vmul.f32 0.03125, %v27_v3 }
  0x91   :  { %v30_v5 = vsub.f32 %v23_v1, %v29_v4 }
  0x93   :  { %v31_v6 = vmul.f32 %v30_v5, %v30_v5 }
  0x95   :  { %v32_v7 = vsel %vm24_vm0, %v31_v6, 0.0 }
  0x96   :  { %33 = vadd.xlane.f32.xlu0 %v32_v7 }
 0x11f   :  { %v34_v11 = vpop.xlane.xlu0 %33 }
 0x120   :  { %v35_v12 = vmul.f32 0.03125, %v34_v11 }
 0x122   :  { %v36_v13 = vadd.f32 1e-05, %v35_v12 }
 0x124   :  { %161 = vrsqrt.f32 %v36_v13 }
 0x131   :  { %v162_v14 = vpop.eup %161 }
 0x132   :  { %v38_v16 = vmul.f32 %v162_v14, %v30_v5 }
 0x134   :  { %v46_v18 = vmul.f32 %v139_v15, %v38_v16 }
 0x136   :  { %v54_v19 = vadd.f32 %v140_v17, %v46_v18 }
 0x138   :  { %v55_v20 = vpack.c.bf16 %v54_v19, %v54_v19 }
 0x13a   :  { %153 = vmatmul.mubr.msk.bf16.vlgmr.msra.gmra.mxu0 %vm79_vm2, %v55_v20 }
 0x1fa   :  { %v117_v22 = vpop.f32.mrf.mxu0 }
 0x1fb   :  { %v118_v23 = vadd.f32 %v141_v21, %v117_v22 }
 0x1fc   :  { %v154_v24 = vpop.f32.mrf.mxu0 }
 0x1fd   :  { %124 = vst.msk [vmem:[#allocation2] sm:$0x3] %vm123_vm3, %v118_v23 }
 0x1fe   :  { %v120_v25 = vpop.f32.mrf.mxu0 }
 0x1ff   :  { %174 = shalt.err (!%p171_p4)
}
 0x200   :  { %134 = dma.vmem_to_hbm [thread:$0]  %s132_s29, 32, %s244_s5, [#allocation3]   ;;  %v155_v26 = vpop.f32.mrf.mxu0 }
 0x201   :  { %183 = dma.done.wait [#allocation3], 32  }
 0x202   :  { %184 = vsyncadd [#allocation3], 4294967264 }
 0x203   :  { %138 = vsyncpa [#allocation3], 1 }

</bundles_post_ra>
